<compile_context>
chip_gen: v5e
topology: v5e:2x2
jax: 0.10.0
libtpu: 0.0.40
codegen_flags: <defaults>
</compile_context>

<pallas_src>
import functools

import jax
import jax.numpy as jnp
from jax.experimental import pallas as pl
from jax.experimental.pallas import tpu as pltpu

# ---- norse default parameters (dt = 1e-3) ----
DT = 1e-3
TAU_MEM_INV = 100.0      # 1 / 1e-2
TAU_SYN_INV = 200.0      # 1 / 5e-3
V_TH = 1.0
V_LEAK = 0.0
V_RESET_ENC = -1000.0    # LIFParameters(v_reset=-1000) used by the encoder

CONV_OUT_C = 2
CONV_K = 4
MAX_CHUNK = 25           # max time steps unrolled per grid step


def _li2_kernel(num_steps, num_chunks, t_chunk,
                x_ref, convw_ref, convb_ref, fcw_ref, fcb_ref,
                final_ref, spkrec_ref, memrec_ref, inspk_ref,
                venc_ref, lifv_ref, lifi_ref, liv_ref, lii_ref,
                enc_ref, conv_ref, pool_ref, lin_ref):
    chunk = pl.program_id(0)
    B, HW = x_ref.shape                    # (batch, 16*16)
    CHW = convw_ref.shape[1]               # 2 * 13 * 13 = 338
    POOLW = fcw_ref.shape[0]               # 338 - 14 = 324

    # ---- initialize all carried state on the first chunk ----
    @pl.when(chunk == 0)
    def _init():
        venc_ref[...] = jnp.zeros_like(venc_ref)
        lifv_ref[...] = jnp.zeros_like(lifv_ref)
        lifi_ref[...] = jnp.zeros_like(lifi_ref)
        liv_ref[...] = jnp.zeros_like(liv_ref)
        lii_ref[...] = jnp.zeros_like(lii_ref)
        final_ref[...] = jnp.zeros_like(final_ref)

    # ---- Phase 1: constant_current_lif_encode(x * 6, v_reset=-1000) --------
    # elementwise on the flattened (B, 256) frame; spikes go to the record
    # output and are stacked into enc_ref as the conv-matmul LHS.
    cur = x_ref[...] * 6.0
    v_enc = venc_ref[...]
    for s in range(t_chunk):
        v_enc = v_enc + DT * TAU_MEM_INV * ((V_LEAK - v_enc) + cur)
        z = (v_enc - V_TH > 0.0).astype(jnp.float32)
        v_enc = v_enc - z * (v_enc - V_RESET_ENC)
        inspk_ref[s] = z
        enc_ref[pl.ds(s * B, B), :] = z
    venc_ref[...] = v_enc

    # ---- Phase 2: Conv2d(1, 2, 4, stride=1) as one MXU matmul per chunk ----
    # spikes are exactly 0/1 -> bf16 LHS is exact; weights pre-arranged as a
    # dense (256, 338) matrix in the wrapper; bias added as a (1, 338) row.
    conv_ref[...] = jnp.dot(
        enc_ref[...].astype(jnp.bfloat16), convw_ref[...],
        preferred_element_type=jnp.float32) + convb_ref[...]

    # ---- Phase 3: LIFCell + MaxPool2d(2, 1), per step -----------------------
    lif_v = lifv_ref[...]                  # (B, 338)
    lif_i = lifi_ref[...]
    for s in range(t_chunk):
        v_dec = lif_v + DT * TAU_MEM_INV * ((V_LEAK - lif_v) + lif_i)
        i_dec = lif_i - DT * TAU_SYN_INV * lif_i
        spk = (v_dec - V_TH > 0.0).astype(jnp.float32)
        lif_v = (1.0 - spk) * v_dec                       # v_reset = 0
        lif_i = i_dec + conv_ref[pl.ds(s * B, B), :]
        spkrec_ref[s] = spk
        # MaxPool2d(2,1) in the flattened (c,h,w) lane layout: the 2x2 window
        # neighbours sit at lane offsets +1, +13, +14.  Positions with h==12
        # or w==12 are garbage but their fc-weight rows are zero.
        p0 = spk[:, 0:POOLW]
        p1 = spk[:, 1:POOLW + 1]
        p13 = spk[:, 13:POOLW + 13]
        p14 = spk[:, 14:POOLW + 14]
        pool_ref[pl.ds(s * B, B), :] = jnp.maximum(jnp.maximum(p0, p1),
                                                   jnp.maximum(p13, p14))
    lifv_ref[...] = lif_v
    lifi_ref[...] = lif_i

    # ---- Phase 4: Linear(288 -> out) as one MXU matmul per chunk ------------
    lin_ref[...] = jnp.dot(
        pool_ref[...].astype(jnp.bfloat16), fcw_ref[...],
        preferred_element_type=jnp.float32) + fcb_ref[...]

    # ---- Phase 5: LICell readout + running mean ------------------------------
    li_v = liv_ref[...]
    li_i = lii_ref[...]
    fsum = jnp.zeros_like(li_v)
    for s in range(t_chunk):
        i_jump = li_i + lin_ref[pl.ds(s * B, B), :]
        v_new = li_v + DT * TAU_MEM_INV * ((V_LEAK - li_v) + i_jump)
        li_i = i_jump - DT * TAU_SYN_INV * i_jump
        li_v = v_new
        memrec_ref[s] = v_new
        if (num_chunks - 1) * t_chunk + s >= num_steps:
            # padded tail step (only reachable on the last chunk): keep the
            # record write (sliced off in the wrapper) but mask the mean.
            fsum = fsum + jnp.where(chunk * t_chunk + s < num_steps,
                                    v_new, jnp.zeros_like(v_new))
        else:
            fsum = fsum + v_new
    liv_ref[...] = li_v
    lii_ref[...] = li_i
    final_ref[...] = final_ref[...] + fsum

    @pl.when(chunk == num_chunks - 1)
    def _finalize():
        final_ref[...] = final_ref[...] * (1.0 / float(num_steps))


def _dense_conv_matrix(conv_w, H, W, HC, WC):
    """Dense (H*W, C*HC*WC) matrix M with
    M[hi*W + wi, c*HC*WC + ho*WC + wo] = conv_w[c, 0, hi-ho, wi-wo]
    when 0 <= hi-ho < K and 0 <= wi-wo < K, else 0."""
    w_sp = conv_w[:, 0, :, :].astype(jnp.float32)             # (C, K, K)
    dh = jnp.arange(H)[:, None] - jnp.arange(HC)[None, :]     # (H, HC)
    dw = jnp.arange(W)[:, None] - jnp.arange(WC)[None, :]     # (W, WC)
    mh = (dh >= 0) & (dh < CONV_K)
    mw = (dw >= 0) & (dw < CONV_K)
    g = w_sp[:, jnp.clip(dh, 0, CONV_K - 1), :]               # (C, H, HC, K)
    g = g[:, :, :, jnp.clip(dw, 0, CONV_K - 1)]               # (C, H, HC, W, WC)
    mask = (mh[:, :, None, None] & mw[None, None, :, :]).astype(jnp.float32)
    full = g * mask[None]                                     # (C, H, HC, W, WC)
    return full.transpose(1, 3, 0, 2, 4).reshape(H * W, CONV_OUT_C * HC * WC)


def li2_forward(x, conv_w, conv_b, fc_w, fc_b, num_steps):
    """Pallas TPU forward of LI2Model.

    Returns (final_output, spk_record, mem_record, input_spikes):
      final_output : (B, out_dim)
      spk_record   : (num_steps, B, 2, 13, 13)
      mem_record   : (num_steps, B, out_dim)
      input_spikes : (num_steps, B, 1, 16, 16)
    """
    B, c_in, H, W = x.shape
    assert c_in == 1
    out_dim = fc_w.shape[0]
    HC, WC = H - CONV_K + 1, W - CONV_K + 1                   # 13, 13
    HP, WP = HC - 1, WC - 1                                   # 12, 12
    HW = H * W                                                # 256
    CHW = CONV_OUT_C * HC * WC                                # 338
    POOLW = CHW - (WC + 1)                                    # 324
    assert fc_w.shape[1] == CONV_OUT_C * HP * WP

    # time chunking: pad num_steps up to num_chunks * t_chunk
    num_chunks = int(pl.cdiv(num_steps, MAX_CHUNK))
    t_chunk = int(pl.cdiv(num_steps, num_chunks))
    padded_steps = num_chunks * t_chunk

    # ---- operand prep (all layout plumbing stays in the wrapper) ----
    x_flat = x[:, 0, :, :].reshape(B, HW).astype(jnp.float32)
    conv_mat = _dense_conv_matrix(conv_w, H, W, HC, WC).astype(jnp.bfloat16)
    conv_bvec = jnp.repeat(conv_b.astype(jnp.float32), HC * WC).reshape(1, CHW)
    # fc weights re-indexed onto the 13x13 conv grid (zeros at h==12 / w==12),
    # flatten order (c, h, w) to match torch's .view(batch, -1).
    fcw4 = fc_w.astype(jnp.float32).reshape(out_dim, CONV_OUT_C, HP, WP)
    fcw_pad = jnp.pad(fcw4, ((0, 0), (0, 0), (0, 1), (0, 1)))
    fcw_mat = fcw_pad.reshape(out_dim, CHW)[:, :POOLW].T.astype(jnp.bfloat16)
    fcb_r = fc_b.astype(jnp.float32).reshape(1, out_dim)

    kernel = functools.partial(_li2_kernel, num_steps, num_chunks, t_chunk)

    out_shape = (
        jax.ShapeDtypeStruct((B, out_dim), jnp.float32),
        jax.ShapeDtypeStruct((padded_steps, B, CHW), jnp.float32),
        jax.ShapeDtypeStruct((padded_steps, B, out_dim), jnp.float32),
        jax.ShapeDtypeStruct((padded_steps, B, HW), jnp.float32),
    )
    grid_spec = pltpu.PrefetchScalarGridSpec(
        num_scalar_prefetch=0,
        grid=(num_chunks,),
        in_specs=[
            pl.BlockSpec((B, HW), lambda c: (0, 0)),            # x (flat)
            pl.BlockSpec((HW, CHW), lambda c: (0, 0)),           # conv matrix
            pl.BlockSpec((1, CHW), lambda c: (0, 0)),             # conv bias row
            pl.BlockSpec((POOLW, out_dim), lambda c: (0, 0)),     # fc matrix
            pl.BlockSpec((1, out_dim), lambda c: (0, 0)),         # fc bias row
        ],
        out_specs=[
            pl.BlockSpec((B, out_dim), lambda c: (0, 0)),         # final (resident)
            pl.BlockSpec((t_chunk, B, CHW), lambda c: (c, 0, 0)),
            pl.BlockSpec((t_chunk, B, out_dim), lambda c: (c, 0, 0)),
            pl.BlockSpec((t_chunk, B, HW), lambda c: (c, 0, 0)),
        ],
        scratch_shapes=[
            pltpu.VMEM((B, HW), jnp.float32),                     # encoder V
            pltpu.VMEM((B, CHW), jnp.float32),                    # LIF V
            pltpu.VMEM((B, CHW), jnp.float32),                    # LIF I
            pltpu.VMEM((B, out_dim), jnp.float32),                # LI V
            pltpu.VMEM((B, out_dim), jnp.float32),                # LI I
            pltpu.VMEM((t_chunk * B, HW), jnp.float32),           # chunk enc spikes
            pltpu.VMEM((t_chunk * B, CHW), jnp.float32),          # chunk conv outs
            pltpu.VMEM((t_chunk * B, POOLW), jnp.float32),        # chunk pooled
            pltpu.VMEM((t_chunk * B, out_dim), jnp.float32),      # chunk linear outs
        ],
    )
    final, spk_rec, mem_rec, in_spk = pl.pallas_call(
        kernel,
        out_shape=out_shape,
        grid_spec=grid_spec,
        compiler_params=pltpu.CompilerParams(
            dimension_semantics=("arbitrary",)),   # time must stay sequential
    )(x_flat, conv_mat, conv_bvec, fcw_mat, fcb_r)

    spk_record = spk_rec[:num_steps].reshape(num_steps, B, CONV_OUT_C, HC, WC)
    mem_record = mem_rec[:num_steps]
    input_spikes = in_spk[:num_steps].reshape(num_steps, B, 1, H, W)
    return final, spk_record, mem_record, input_spikes


if __name__ == "__main__":
    B, H, W = 2, 16, 16          # pooled 2*12*12 = 288 -> Linear(288, out)
    out_dim = 10
    num_steps = 8                # small test value (module default is 50)

    key = jax.random.PRNGKey(0)
    kx, kcw, kcb, kfw, kfb = jax.random.split(key, 5)

    # deterministic parameter init (PyTorch-like uniform bounds)
    conv_bound = 1.0 / (1 * CONV_K * CONV_K) ** 0.5
    fc_bound = 1.0 / 288.0 ** 0.5
    x = jax.random.uniform(kx, (B, 1, H, W), jnp.float32)
    conv_w = jax.random.uniform(kcw, (CONV_OUT_C, 1, CONV_K, CONV_K),
                                jnp.float32, -conv_bound, conv_bound)
    conv_b = jax.random.uniform(kcb, (CONV_OUT_C,), jnp.float32,
                                -conv_bound, conv_bound)
    fc_w = jax.random.uniform(kfw, (out_dim, 288), jnp.float32,
                              -fc_bound, fc_bound)
    fc_b = jax.random.uniform(kfb, (out_dim,), jnp.float32, -fc_bound, fc_bound)

    outs = li2_forward(x, conv_w, conv_b, fc_w, fc_b, num_steps)
    jax.block_until_ready(outs)
    final, spk_record, mem_record, input_spikes = outs

    assert final.shape == (B, out_dim)
    assert spk_record.shape == (num_steps, B, 2, 13, 13)
    assert mem_record.shape == (num_steps, B, out_dim)
    assert input_spikes.shape == (num_steps, B, 1, H, W)
    assert bool(jnp.all(jnp.isfinite(final)))
    assert bool(jnp.all(jnp.isfinite(mem_record)))
    assert bool(jnp.all((spk_record == 0.0) | (spk_record == 1.0)))
    assert bool(jnp.all((input_spikes == 0.0) | (input_spikes == 1.0)))
    print("KERNEL_OK")
</pallas_src>

<mosaic_0001>
module attributes {stable_mosaic.version = 11 : i64} {
  func.func @_li2_kernel(%arg0: i32, %arg1: memref<2x256xf32, #tpu.memory_space<vmem>>, %arg2: memref<256x338xbf16, #tpu.memory_space<vmem>>, %arg3: memref<1x338xf32, #tpu.memory_space<vmem>>, %arg4: memref<324x10xbf16, #tpu.memory_space<vmem>>, %arg5: memref<1x10xf32, #tpu.memory_space<vmem>>, %arg6: memref<2x10xf32, #tpu.memory_space<vmem>>, %arg7: memref<8x2x338xf32, #tpu.memory_space<vmem>>, %arg8: memref<8x2x10xf32, #tpu.memory_space<vmem>>, %arg9: memref<8x2x256xf32, #tpu.memory_space<vmem>>, %arg10: memref<2x256xf32, #tpu.memory_space<vmem>>, %arg11: memref<2x338xf32, #tpu.memory_space<vmem>>, %arg12: memref<2x338xf32, #tpu.memory_space<vmem>>, %arg13: memref<2x10xf32, #tpu.memory_space<vmem>>, %arg14: memref<2x10xf32, #tpu.memory_space<vmem>>, %arg15: memref<16x256xf32, #tpu.memory_space<vmem>>, %arg16: memref<16x338xf32, #tpu.memory_space<vmem>>, %arg17: memref<16x324xf32, #tpu.memory_space<vmem>>, %arg18: memref<16x10xf32, #tpu.memory_space<vmem>>) attributes {dimension_semantics = [#tpu.dimension_semantics<arbitrary>], iteration_bounds = array<i64: 1>, scalar_prefetch = 0 : i64, scratch_operands = 9 : i64, tpu.core_type = #tpu.core_type<tc>, window_params = [{pipeline_mode = #tpu.pipeline_mode<synchronous>, transform_indices = @transform_0, window_bounds = array<i64: 2, 256>}, {pipeline_mode = #tpu.pipeline_mode<synchronous>, transform_indices = @transform_1, window_bounds = array<i64: 256, 338>}, {pipeline_mode = #tpu.pipeline_mode<synchronous>, transform_indices = @transform_2, window_bounds = array<i64: 1, 338>}, {pipeline_mode = #tpu.pipeline_mode<synchronous>, transform_indices = @transform_3, window_bounds = array<i64: 324, 10>}, {pipeline_mode = #tpu.pipeline_mode<synchronous>, transform_indices = @transform_4, window_bounds = array<i64: 1, 10>}, {pipeline_mode = #tpu.pipeline_mode<synchronous>, transform_indices = @transform_5, window_bounds = array<i64: 2, 10>}, {transform_indices = @transform_6, window_bounds = array<i64: 8, 2, 338>}, {transform_indices = @transform_7, window_bounds = array<i64: 8, 2, 10>}, {transform_indices = @transform_8, window_bounds = array<i64: 8, 2, 256>}]} {
    %c0_i32 = arith.constant 0 : i32
    %0 = arith.cmpi eq, %arg0, %c0_i32 : i32
    %1 = arith.extui %0 : i1 to i32
    %c0_i32_0 = arith.constant 0 : i32
    %2 = arith.cmpi ne, %1, %c0_i32_0 : i32
    scf.if %2 {
      %cst_284 = arith.constant 0.000000e+00 : f32
      %567 = vector.broadcast %cst_284 : f32 to vector<2x256xf32>
      %c0_285 = arith.constant 0 : index
      %c0_286 = arith.constant 0 : index
      %568 = vector.load %arg10[%c0_285, %c0_286] : memref<2x256xf32, #tpu.memory_space<vmem>>, vector<2x256xf32>
      tpu.vector_store %arg10[%c0_285, %c0_286], %567 {strides = array<i32>} : memref<2x256xf32, #tpu.memory_space<vmem>>, vector<2x256xf32>,
      %cst_287 = arith.constant 0.000000e+00 : f32
      %569 = vector.broadcast %cst_287 : f32 to vector<2x338xf32>
      %c0_288 = arith.constant 0 : index
      %c0_289 = arith.constant 0 : index
      %570 = vector.load %arg11[%c0_288, %c0_289] : memref<2x338xf32, #tpu.memory_space<vmem>>, vector<2x338xf32>
      tpu.vector_store %arg11[%c0_288, %c0_289], %569 {strides = array<i32>} : memref<2x338xf32, #tpu.memory_space<vmem>>, vector<2x338xf32>,
      %cst_290 = arith.constant 0.000000e+00 : f32
      %571 = vector.broadcast %cst_290 : f32 to vector<2x338xf32>
      %c0_291 = arith.constant 0 : index
      %c0_292 = arith.constant 0 : index
      %572 = vector.load %arg12[%c0_291, %c0_292] : memref<2x338xf32, #tpu.memory_space<vmem>>, vector<2x338xf32>
      tpu.vector_store %arg12[%c0_291, %c0_292], %571 {strides = array<i32>} : memref<2x338xf32, #tpu.memory_space<vmem>>, vector<2x338xf32>,
      %cst_293 = arith.constant 0.000000e+00 : f32
      %573 = vector.broadcast %cst_293 : f32 to vector<2x10xf32>
      %c0_294 = arith.constant 0 : index
      %c0_295 = arith.constant 0 : index
      %574 = vector.load %arg13[%c0_294, %c0_295] : memref<2x10xf32, #tpu.memory_space<vmem>>, vector<2x10xf32>
      tpu.vector_store %arg13[%c0_294, %c0_295], %573 {strides = array<i32>} : memref<2x10xf32, #tpu.memory_space<vmem>>, vector<2x10xf32>,
      %cst_296 = arith.constant 0.000000e+00 : f32
      %575 = vector.broadcast %cst_296 : f32 to vector<2x10xf32>
      %c0_297 = arith.constant 0 : index
      %c0_298 = arith.constant 0 : index
      %576 = vector.load %arg14[%c0_297, %c0_298] : memref<2x10xf32, #tpu.memory_space<vmem>>, vector<2x10xf32>
      tpu.vector_store %arg14[%c0_297, %c0_298], %575 {strides = array<i32>} : memref<2x10xf32, #tpu.memory_space<vmem>>, vector<2x10xf32>,
      %cst_299 = arith.constant 0.000000e+00 : f32
      %577 = vector.broadcast %cst_299 : f32 to vector<2x10xf32>
      %c0_300 = arith.constant 0 : index
      %c0_301 = arith.constant 0 : index
      %578 = vector.load %arg6[%c0_300, %c0_301] : memref<2x10xf32, #tpu.memory_space<vmem>>, vector<2x10xf32>
      tpu.vector_store %arg6[%c0_300, %c0_301], %577 {strides = array<i32>} : memref<2x10xf32, #tpu.memory_space<vmem>>, vector<2x10xf32>,
    } else {
    }
    %c0 = arith.constant 0 : index
    %c0_1 = arith.constant 0 : index
    %3 = vector.load %arg1[%c0, %c0_1] : memref<2x256xf32, #tpu.memory_space<vmem>>, vector<2x256xf32>
    %cst = arith.constant 6.000000e+00 : f32
    %4 = vector.broadcast %cst : f32 to vector<2x256xf32>
    %5 = arith.mulf %3, %4 : vector<2x256xf32>
    %c0_2 = arith.constant 0 : index
    %c0_3 = arith.constant 0 : index
    %6 = vector.load %arg10[%c0_2, %c0_3] : memref<2x256xf32, #tpu.memory_space<vmem>>, vector<2x256xf32>
    %cst_4 = arith.constant 0.000000e+00 : f32
    %7 = vector.broadcast %cst_4 : f32 to vector<2x256xf32>
    %8 = arith.subf %7, %6 : vector<2x256xf32>
    %9 = arith.addf %8, %5 : vector<2x256xf32>
    %cst_5 = arith.constant 1.000000e-01 : f32
    %10 = vector.broadcast %cst_5 : f32 to vector<2x256xf32>
    %11 = arith.mulf %10, %9 : vector<2x256xf32>
    %12 = arith.addf %6, %11 : vector<2x256xf32>
    %cst_6 = arith.constant 1.000000e+00 : f32
    %13 = vector.broadcast %cst_6 : f32 to vector<2x256xf32>
    %14 = arith.subf %12, %13 : vector<2x256xf32>
    %cst_7 = arith.constant 0.000000e+00 : f32
    %15 = vector.broadcast %cst_7 : f32 to vector<2x256xf32>
    %16 = arith.cmpf ogt, %14, %15 : vector<2x256xf32>
    %17 = arith.extui %16 : vector<2x256xi1> to vector<2x256xi32>
    %18 = arith.sitofp %17 : vector<2x256xi32> to vector<2x256xf32>
    %cst_8 = arith.constant -1.000000e+03 : f32
    %19 = vector.broadcast %cst_8 : f32 to vector<2x256xf32>
    %20 = arith.subf %12, %19 : vector<2x256xf32>
    %21 = arith.mulf %18, %20 : vector<2x256xf32>
    %22 = arith.subf %12, %21 : vector<2x256xf32>
    %c0_9 = arith.constant 0 : index
    %c0_10 = arith.constant 0 : index
    %c0_11 = arith.constant 0 : index
    %23 = vector.load %arg9[%c0_9, %c0_10, %c0_11] : memref<8x2x256xf32, #tpu.memory_space<vmem>>, vector<1x2x256xf32>
    %24 = vector.shape_cast %23 : vector<1x2x256xf32> to vector<2x256xf32>
    %25 = vector.shape_cast %18 : vector<2x256xf32> to vector<1x2x256xf32>
    tpu.vector_store %arg9[%c0_9, %c0_10, %c0_11], %25 {strides = array<i32>} : memref<8x2x256xf32, #tpu.memory_space<vmem>>, vector<1x2x256xf32>,
    %c0_12 = arith.constant 0 : index
    %c0_13 = arith.constant 0 : index
    %26 = vector.load %arg15[%c0_12, %c0_13] : memref<16x256xf32, #tpu.memory_space<vmem>>, vector<2x256xf32>
    tpu.vector_store %arg15[%c0_12, %c0_13], %18 {strides = array<i32>} : memref<16x256xf32, #tpu.memory_space<vmem>>, vector<2x256xf32>,
    %cst_14 = arith.constant 0.000000e+00 : f32
    %27 = vector.broadcast %cst_14 : f32 to vector<2x256xf32>
    %28 = arith.subf %27, %22 : vector<2x256xf32>
    %29 = arith.addf %28, %5 : vector<2x256xf32>
    %cst_15 = arith.constant 1.000000e-01 : f32
    %30 = vector.broadcast %cst_15 : f32 to vector<2x256xf32>
    %31 = arith.mulf %30, %29 : vector<2x256xf32>
    %32 = arith.addf %22, %31 : vector<2x256xf32>
    %cst_16 = arith.constant 1.000000e+00 : f32
    %33 = vector.broadcast %cst_16 : f32 to vector<2x256xf32>
    %34 = arith.subf %32, %33 : vector<2x256xf32>
    %cst_17 = arith.constant 0.000000e+00 : f32
    %35 = vector.broadcast %cst_17 : f32 to vector<2x256xf32>
    %36 = arith.cmpf ogt, %34, %35 : vector<2x256xf32>
    %37 = arith.extui %36 : vector<2x256xi1> to vector<2x256xi32>
    %38 = arith.sitofp %37 : vector<2x256xi32> to vector<2x256xf32>
    %cst_18 = arith.constant -1.000000e+03 : f32
    %39 = vector.broadcast %cst_18 : f32 to vector<2x256xf32>
    %40 = arith.subf %32, %39 : vector<2x256xf32>
    %41 = arith.mulf %38, %40 : vector<2x256xf32>
    %42 = arith.subf %32, %41 : vector<2x256xf32>
    %c1 = arith.constant 1 : index
    %c0_19 = arith.constant 0 : index
    %c0_20 = arith.constant 0 : index
    %43 = vector.load %arg9[%c1, %c0_19, %c0_20] : memref<8x2x256xf32, #tpu.memory_space<vmem>>, vector<1x2x256xf32>
    %44 = vector.shape_cast %43 : vector<1x2x256xf32> to vector<2x256xf32>
    %45 = vector.shape_cast %38 : vector<2x256xf32> to vector<1x2x256xf32>
    tpu.vector_store %arg9[%c1, %c0_19, %c0_20], %45 {strides = array<i32>} : memref<8x2x256xf32, #tpu.memory_space<vmem>>, vector<1x2x256xf32>,
    %c2 = arith.constant 2 : index
    %c0_21 = arith.constant 0 : index
    %46 = vector.load %arg15[%c2, %c0_21] : memref<16x256xf32, #tpu.memory_space<vmem>>, vector<2x256xf32>
    tpu.vector_store %arg15[%c2, %c0_21], %38 {strides = array<i32>} : memref<16x256xf32, #tpu.memory_space<vmem>>, vector<2x256xf32>,
    %cst_22 = arith.constant 0.000000e+00 : f32
    %47 = vector.broadcast %cst_22 : f32 to vector<2x256xf32>
    %48 = arith.subf %47, %42 : vector<2x256xf32>
    %49 = arith.addf %48, %5 : vector<2x256xf32>
    %cst_23 = arith.constant 1.000000e-01 : f32
    %50 = vector.broadcast %cst_23 : f32 to vector<2x256xf32>
    %51 = arith.mulf %50, %49 : vector<2x256xf32>
    %52 = arith.addf %42, %51 : vector<2x256xf32>
    %cst_24 = arith.constant 1.000000e+00 : f32
    %53 = vector.broadcast %cst_24 : f32 to vector<2x256xf32>
    %54 = arith.subf %52, %53 : vector<2x256xf32>
    %cst_25 = arith.constant 0.000000e+00 : f32
    %55 = vector.broadcast %cst_25 : f32 to vector<2x256xf32>
    %56 = arith.cmpf ogt, %54, %55 : vector<2x256xf32>
    %57 = arith.extui %56 : vector<2x256xi1> to vector<2x256xi32>
    %58 = arith.sitofp %57 : vector<2x256xi32> to vector<2x256xf32>
    %cst_26 = arith.constant -1.000000e+03 : f32
    %59 = vector.broadcast %cst_26 : f32 to vector<2x256xf32>
    %60 = arith.subf %52, %59 : vector<2x256xf32>
    %61 = arith.mulf %58, %60 : vector<2x256xf32>
    %62 = arith.subf %52, %61 : vector<2x256xf32>
    %c2_27 = arith.constant 2 : index
    %c0_28 = arith.constant 0 : index
    %c0_29 = arith.constant 0 : index
    %63 = vector.load %arg9[%c2_27, %c0_28, %c0_29] : memref<8x2x256xf32, #tpu.memory_space<vmem>>, vector<1x2x256xf32>
    %64 = vector.shape_cast %63 : vector<1x2x256xf32> to vector<2x256xf32>
    %65 = vector.shape_cast %58 : vector<2x256xf32> to vector<1x2x256xf32>
    tpu.vector_store %arg9[%c2_27, %c0_28, %c0_29], %65 {strides = array<i32>} : memref<8x2x256xf32, #tpu.memory_space<vmem>>, vector<1x2x256xf32>,
    %c4 = arith.constant 4 : index
    %c0_30 = arith.constant 0 : index
    %66 = vector.load %arg15[%c4, %c0_30] : memref<16x256xf32, #tpu.memory_space<vmem>>, vector<2x256xf32>
    tpu.vector_store %arg15[%c4, %c0_30], %58 {strides = array<i32>} : memref<16x256xf32, #tpu.memory_space<vmem>>, vector<2x256xf32>,
    %cst_31 = arith.constant 0.000000e+00 : f32
    %67 = vector.broadcast %cst_31 : f32 to vector<2x256xf32>
    %68 = arith.subf %67, %62 : vector<2x256xf32>
    %69 = arith.addf %68, %5 : vector<2x256xf32>
    %cst_32 = arith.constant 1.000000e-01 : f32
    %70 = vector.broadcast %cst_32 : f32 to vector<2x256xf32>
    %71 = arith.mulf %70, %69 : vector<2x256xf32>
    %72 = arith.addf %62, %71 : vector<2x256xf32>
    %cst_33 = arith.constant 1.000000e+00 : f32
    %73 = vector.broadcast %cst_33 : f32 to vector<2x256xf32>
    %74 = arith.subf %72, %73 : vector<2x256xf32>
    %cst_34 = arith.constant 0.000000e+00 : f32
    %75 = vector.broadcast %cst_34 : f32 to vector<2x256xf32>
    %76 = arith.cmpf ogt, %74, %75 : vector<2x256xf32>
    %77 = arith.extui %76 : vector<2x256xi1> to vector<2x256xi32>
    %78 = arith.sitofp %77 : vector<2x256xi32> to vector<2x256xf32>
    %cst_35 = arith.constant -1.000000e+03 : f32
    %79 = vector.broadcast %cst_35 : f32 to vector<2x256xf32>
    %80 = arith.subf %72, %79 : vector<2x256xf32>
    %81 = arith.mulf %78, %80 : vector<2x256xf32>
    %82 = arith.subf %72, %81 : vector<2x256xf32>
    %c3 = arith.constant 3 : index
    %c0_36 = arith.constant 0 : index
    %c0_37 = arith.constant 0 : index
    %83 = vector.load %arg9[%c3, %c0_36, %c0_37] : memref<8x2x256xf32, #tpu.memory_space<vmem>>, vector<1x2x256xf32>
    %84 = vector.shape_cast %83 : vector<1x2x256xf32> to vector<2x256xf32>
    %85 = vector.shape_cast %78 : vector<2x256xf32> to vector<1x2x256xf32>
    tpu.vector_store %arg9[%c3, %c0_36, %c0_37], %85 {strides = array<i32>} : memref<8x2x256xf32, #tpu.memory_space<vmem>>, vector<1x2x256xf32>,
    %c6 = arith.constant 6 : index
    %c0_38 = arith.constant 0 : index
    %86 = vector.load %arg15[%c6, %c0_38] : memref<16x256xf32, #tpu.memory_space<vmem>>, vector<2x256xf32>
    tpu.vector_store %arg15[%c6, %c0_38], %78 {strides = array<i32>} : memref<16x256xf32, #tpu.memory_space<vmem>>, vector<2x256xf32>,
    %cst_39 = arith.constant 0.000000e+00 : f32
    %87 = vector.broadcast %cst_39 : f32 to vector<2x256xf32>
    %88 = arith.subf %87, %82 : vector<2x256xf32>
    %89 = arith.addf %88, %5 : vector<2x256xf32>
    %cst_40 = arith.constant 1.000000e-01 : f32
    %90 = vector.broadcast %cst_40 : f32 to vector<2x256xf32>
    %91 = arith.mulf %90, %89 : vector<2x256xf32>
    %92 = arith.addf %82, %91 : vector<2x256xf32>
    %cst_41 = arith.constant 1.000000e+00 : f32
    %93 = vector.broadcast %cst_41 : f32 to vector<2x256xf32>
    %94 = arith.subf %92, %93 : vector<2x256xf32>
    %cst_42 = arith.constant 0.000000e+00 : f32
    %95 = vector.broadcast %cst_42 : f32 to vector<2x256xf32>
    %96 = arith.cmpf ogt, %94, %95 : vector<2x256xf32>
    %97 = arith.extui %96 : vector<2x256xi1> to vector<2x256xi32>
    %98 = arith.sitofp %97 : vector<2x256xi32> to vector<2x256xf32>
    %cst_43 = arith.constant -1.000000e+03 : f32
    %99 = vector.broadcast %cst_43 : f32 to vector<2x256xf32>
    %100 = arith.subf %92, %99 : vector<2x256xf32>
    %101 = arith.mulf %98, %100 : vector<2x256xf32>
    %102 = arith.subf %92, %101 : vector<2x256xf32>
    %c4_44 = arith.constant 4 : index
    %c0_45 = arith.constant 0 : index
    %c0_46 = arith.constant 0 : index
    %103 = vector.load %arg9[%c4_44, %c0_45, %c0_46] : memref<8x2x256xf32, #tpu.memory_space<vmem>>, vector<1x2x256xf32>
    %104 = vector.shape_cast %103 : vector<1x2x256xf32> to vector<2x256xf32>
    %105 = vector.shape_cast %98 : vector<2x256xf32> to vector<1x2x256xf32>
    tpu.vector_store %arg9[%c4_44, %c0_45, %c0_46], %105 {strides = array<i32>} : memref<8x2x256xf32, #tpu.memory_space<vmem>>, vector<1x2x256xf32>,
    %c8 = arith.constant 8 : index
    %c0_47 = arith.constant 0 : index
    %106 = vector.load %arg15[%c8, %c0_47] : memref<16x256xf32, #tpu.memory_space<vmem>>, vector<2x256xf32>
    tpu.vector_store %arg15[%c8, %c0_47], %98 {strides = array<i32>} : memref<16x256xf32, #tpu.memory_space<vmem>>, vector<2x256xf32>,
    %cst_48 = arith.constant 0.000000e+00 : f32
    %107 = vector.broadcast %cst_48 : f32 to vector<2x256xf32>
    %108 = arith.subf %107, %102 : vector<2x256xf32>
    %109 = arith.addf %108, %5 : vector<2x256xf32>
    %cst_49 = arith.constant 1.000000e-01 : f32
    %110 = vector.broadcast %cst_49 : f32 to vector<2x256xf32>
    %111 = arith.mulf %110, %109 : vector<2x256xf32>
    %112 = arith.addf %102, %111 : vector<2x256xf32>
    %cst_50 = arith.constant 1.000000e+00 : f32
    %113 = vector.broadcast %cst_50 : f32 to vector<2x256xf32>
    %114 = arith.subf %112, %113 : vector<2x256xf32>
    %cst_51 = arith.constant 0.000000e+00 : f32
    %115 = vector.broadcast %cst_51 : f32 to vector<2x256xf32>
    %116 = arith.cmpf ogt, %114, %115 : vector<2x256xf32>
    %117 = arith.extui %116 : vector<2x256xi1> to vector<2x256xi32>
    %118 = arith.sitofp %117 : vector<2x256xi32> to vector<2x256xf32>
    %cst_52 = arith.constant -1.000000e+03 : f32
    %119 = vector.broadcast %cst_52 : f32 to vector<2x256xf32>
    %120 = arith.subf %112, %119 : vector<2x256xf32>
    %121 = arith.mulf %118, %120 : vector<2x256xf32>
    %122 = arith.subf %112, %121 : vector<2x256xf32>
    %c5 = arith.constant 5 : index
    %c0_53 = arith.constant 0 : index
    %c0_54 = arith.constant 0 : index
    %123 = vector.load %arg9[%c5, %c0_53, %c0_54] : memref<8x2x256xf32, #tpu.memory_space<vmem>>, vector<1x2x256xf32>
    %124 = vector.shape_cast %123 : vector<1x2x256xf32> to vector<2x256xf32>
    %125 = vector.shape_cast %118 : vector<2x256xf32> to vector<1x2x256xf32>
    tpu.vector_store %arg9[%c5, %c0_53, %c0_54], %125 {strides = array<i32>} : memref<8x2x256xf32, #tpu.memory_space<vmem>>, vector<1x2x256xf32>,
    %c10 = arith.constant 10 : index
    %c0_55 = arith.constant 0 : index
    %126 = vector.load %arg15[%c10, %c0_55] : memref<16x256xf32, #tpu.memory_space<vmem>>, vector<2x256xf32>
    tpu.vector_store %arg15[%c10, %c0_55], %118 {strides = array<i32>} : memref<16x256xf32, #tpu.memory_space<vmem>>, vector<2x256xf32>,
    %cst_56 = arith.constant 0.000000e+00 : f32
    %127 = vector.broadcast %cst_56 : f32 to vector<2x256xf32>
    %128 = arith.subf %127, %122 : vector<2x256xf32>
    %129 = arith.addf %128, %5 : vector<2x256xf32>
    %cst_57 = arith.constant 1.000000e-01 : f32
    %130 = vector.broadcast %cst_57 : f32 to vector<2x256xf32>
    %131 = arith.mulf %130, %129 : vector<2x256xf32>
    %132 = arith.addf %122, %131 : vector<2x256xf32>
    %cst_58 = arith.constant 1.000000e+00 : f32
    %133 = vector.broadcast %cst_58 : f32 to vector<2x256xf32>
    %134 = arith.subf %132, %133 : vector<2x256xf32>
    %cst_59 = arith.constant 0.000000e+00 : f32
    %135 = vector.broadcast %cst_59 : f32 to vector<2x256xf32>
    %136 = arith.cmpf ogt, %134, %135 : vector<2x256xf32>
    %137 = arith.extui %136 : vector<2x256xi1> to vector<2x256xi32>
    %138 = arith.sitofp %137 : vector<2x256xi32> to vector<2x256xf32>
    %cst_60 = arith.constant -1.000000e+03 : f32
    %139 = vector.broadcast %cst_60 : f32 to vector<2x256xf32>
    %140 = arith.subf %132, %139 : vector<2x256xf32>
    %141 = arith.mulf %138, %140 : vector<2x256xf32>
    %142 = arith.subf %132, %141 : vector<2x256xf32>
    %c6_61 = arith.constant 6 : index
    %c0_62 = arith.constant 0 : index
    %c0_63 = arith.constant 0 : index
    %143 = vector.load %arg9[%c6_61, %c0_62, %c0_63] : memref<8x2x256xf32, #tpu.memory_space<vmem>>, vector<1x2x256xf32>
    %144 = vector.shape_cast %143 : vector<1x2x256xf32> to vector<2x256xf32>
    %145 = vector.shape_cast %138 : vector<2x256xf32> to vector<1x2x256xf32>
    tpu.vector_store %arg9[%c6_61, %c0_62, %c0_63], %145 {strides = array<i32>} : memref<8x2x256xf32, #tpu.memory_space<vmem>>, vector<1x2x256xf32>,
    %c12 = arith.constant 12 : index
    %c0_64 = arith.constant 0 : index
    %146 = vector.load %arg15[%c12, %c0_64] : memref<16x256xf32, #tpu.memory_space<vmem>>, vector<2x256xf32>
    tpu.vector_store %arg15[%c12, %c0_64], %138 {strides = array<i32>} : memref<16x256xf32, #tpu.memory_space<vmem>>, vector<2x256xf32>,
    %cst_65 = arith.constant 0.000000e+00 : f32
    %147 = vector.broadcast %cst_65 : f32 to vector<2x256xf32>
    %148 = arith.subf %147, %142 : vector<2x256xf32>
    %149 = arith.addf %148, %5 : vector<2x256xf32>
    %cst_66 = arith.constant 1.000000e-01 : f32
    %150 = vector.broadcast %cst_66 : f32 to vector<2x256xf32>
    %151 = arith.mulf %150, %149 : vector<2x256xf32>
    %152 = arith.addf %142, %151 : vector<2x256xf32>
    %cst_67 = arith.constant 1.000000e+00 : f32
    %153 = vector.broadcast %cst_67 : f32 to vector<2x256xf32>
    %154 = arith.subf %152, %153 : vector<2x256xf32>
    %cst_68 = arith.constant 0.000000e+00 : f32
    %155 = vector.broadcast %cst_68 : f32 to vector<2x256xf32>
    %156 = arith.cmpf ogt, %154, %155 : vector<2x256xf32>
    %157 = arith.extui %156 : vector<2x256xi1> to vector<2x256xi32>
    %158 = arith.sitofp %157 : vector<2x256xi32> to vector<2x256xf32>
    %cst_69 = arith.constant -1.000000e+03 : f32
    %159 = vector.broadcast %cst_69 : f32 to vector<2x256xf32>
    %160 = arith.subf %152, %159 : vector<2x256xf32>
    %161 = arith.mulf %158, %160 : vector<2x256xf32>
    %162 = arith.subf %152, %161 : vector<2x256xf32>
    %c7 = arith.constant 7 : index
    %c0_70 = arith.constant 0 : index
    %c0_71 = arith.constant 0 : index
    %163 = vector.load %arg9[%c7, %c0_70, %c0_71] : memref<8x2x256xf32, #tpu.memory_space<vmem>>, vector<1x2x256xf32>
    %164 = vector.shape_cast %163 : vector<1x2x256xf32> to vector<2x256xf32>
    %165 = vector.shape_cast %158 : vector<2x256xf32> to vector<1x2x256xf32>
    tpu.vector_store %arg9[%c7, %c0_70, %c0_71], %165 {strides = array<i32>} : memref<8x2x256xf32, #tpu.memory_space<vmem>>, vector<1x2x256xf32>,
    %c14 = arith.constant 14 : index
    %c0_72 = arith.constant 0 : index
    %166 = vector.load %arg15[%c14, %c0_72] : memref<16x256xf32, #tpu.memory_space<vmem>>, vector<2x256xf32>
    tpu.vector_store %arg15[%c14, %c0_72], %158 {strides = array<i32>} : memref<16x256xf32, #tpu.memory_space<vmem>>, vector<2x256xf32>,
    %c0_73 = arith.constant 0 : index
    %c0_74 = arith.constant 0 : index
    %167 = vector.load %arg10[%c0_73, %c0_74] : memref<2x256xf32, #tpu.memory_space<vmem>>, vector<2x256xf32>
    tpu.vector_store %arg10[%c0_73, %c0_74], %162 {strides = array<i32>} : memref<2x256xf32, #tpu.memory_space<vmem>>, vector<2x256xf32>,
    %c0_75 = arith.constant 0 : index
    %c0_76 = arith.constant 0 : index
    %168 = vector.load %arg15[%c0_75, %c0_76] : memref<16x256xf32, #tpu.memory_space<vmem>>, vector<16x256xf32>
    %169 = arith.truncf %168 : vector<16x256xf32> to vector<16x256xbf16>
    %c0_77 = arith.constant 0 : index
    %c0_78 = arith.constant 0 : index
    %170 = vector.load %arg2[%c0_77, %c0_78] : memref<256x338xbf16, #tpu.memory_space<vmem>>, vector<256x338xbf16>
    %cst_79 = arith.constant dense<0.000000e+00> : vector<16x338xf32>
    %171 = tpu.matmul %169, %170, %cst_79 {dimension_numbers = #tpu.dot_dimension_numbers<[1], [0], [0], [1], [0, 0, 1, 1], [], []>} : vector<16x256xbf16>, vector<256x338xbf16>, vector<16x338xf32> -> vector<16x338xf32>
    %c0_80 = arith.constant 0 : index
    %c0_81 = arith.constant 0 : index
    %172 = vector.load %arg3[%c0_80, %c0_81] : memref<1x338xf32, #tpu.memory_space<vmem>>, vector<1x338xf32>
    %173 = vector.broadcast %172 : vector<1x338xf32> to vector<16x338xf32>
    %174 = arith.addf %171, %173 : vector<16x338xf32>
    %c0_82 = arith.constant 0 : index
    %c0_83 = arith.constant 0 : index
    %175 = vector.load %arg16[%c0_82, %c0_83] : memref<16x338xf32, #tpu.memory_space<vmem>>, vector<16x338xf32>
    tpu.vector_store %arg16[%c0_82, %c0_83], %174 {strides = array<i32>} : memref<16x338xf32, #tpu.memory_space<vmem>>, vector<16x338xf32>,
    %c0_84 = arith.constant 0 : index
    %c0_85 = arith.constant 0 : index
    %176 = vector.load %arg11[%c0_84, %c0_85] : memref<2x338xf32, #tpu.memory_space<vmem>>, vector<2x338xf32>
    %c0_86 = arith.constant 0 : index
    %c0_87 = arith.constant 0 : index
    %177 = vector.load %arg12[%c0_86, %c0_87] : memref<2x338xf32, #tpu.memory_space<vmem>>, vector<2x338xf32>
    %cst_88 = arith.constant 0.000000e+00 : f32
    %178 = vector.broadcast %cst_88 : f32 to vector<2x338xf32>
    %179 = arith.subf %178, %176 : vector<2x338xf32>
    %180 = arith.addf %179, %177 : vector<2x338xf32>
    %cst_89 = arith.constant 1.000000e-01 : f32
    %181 = vector.broadcast %cst_89 : f32 to vector<2x338xf32>
    %182 = arith.mulf %181, %180 : vector<2x338xf32>
    %183 = arith.addf %176, %182 : vector<2x338xf32>
    %cst_90 = arith.constant 2.000000e-01 : f32
    %184 = vector.broadcast %cst_90 : f32 to vector<2x338xf32>
    %185 = arith.mulf %184, %177 : vector<2x338xf32>
    %186 = arith.subf %177, %185 : vector<2x338xf32>
    %cst_91 = arith.constant 1.000000e+00 : f32
    %187 = vector.broadcast %cst_91 : f32 to vector<2x338xf32>
    %188 = arith.subf %183, %187 : vector<2x338xf32>
    %cst_92 = arith.constant 0.000000e+00 : f32
    %189 = vector.broadcast %cst_92 : f32 to vector<2x338xf32>
    %190 = arith.cmpf ogt, %188, %189 : vector<2x338xf32>
    %191 = arith.extui %190 : vector<2x338xi1> to vector<2x338xi32>
    %192 = arith.sitofp %191 : vector<2x338xi32> to vector<2x338xf32>
    %cst_93 = arith.constant 1.000000e+00 : f32
    %193 = vector.broadcast %cst_93 : f32 to vector<2x338xf32>
    %194 = arith.subf %193, %192 : vector<2x338xf32>
    %195 = arith.mulf %194, %183 : vector<2x338xf32>
    %c0_94 = arith.constant 0 : index
    %c0_95 = arith.constant 0 : index
    %196 = vector.load %arg16[%c0_94, %c0_95] : memref<16x338xf32, #tpu.memory_space<vmem>>, vector<2x338xf32>
    %197 = arith.addf %186, %196 : vector<2x338xf32>
    %c0_96 = arith.constant 0 : index
    %c0_97 = arith.constant 0 : index
    %c0_98 = arith.constant 0 : index
    %198 = vector.load %arg7[%c0_96, %c0_97, %c0_98] : memref<8x2x338xf32, #tpu.memory_space<vmem>>, vector<1x2x338xf32>
    %199 = vector.shape_cast %198 : vector<1x2x338xf32> to vector<2x338xf32>
    %200 = vector.shape_cast %192 : vector<2x338xf32> to vector<1x2x338xf32>
    tpu.vector_store %arg7[%c0_96, %c0_97, %c0_98], %200 {strides = array<i32>} : memref<8x2x338xf32, #tpu.memory_space<vmem>>, vector<1x2x338xf32>,
    %201 = vector.extract_strided_slice %192 {offsets = [0, 0], sizes = [2, 324], strides = [1, 1]} : vector<2x338xf32> to vector<2x324xf32>
    %202 = vector.extract_strided_slice %192 {offsets = [0, 1], sizes = [2, 324], strides = [1, 1]} : vector<2x338xf32> to vector<2x324xf32>
    %203 = vector.extract_strided_slice %192 {offsets = [0, 13], sizes = [2, 324], strides = [1, 1]} : vector<2x338xf32> to vector<2x324xf32>
    %204 = vector.extract_strided_slice %192 {offsets = [0, 14], sizes = [2, 324], strides = [1, 1]} : vector<2x338xf32> to vector<2x324xf32>
    %205 = arith.maximumf %201, %202 : vector<2x324xf32>
    %206 = arith.maximumf %203, %204 : vector<2x324xf32>
    %207 = arith.maximumf %205, %206 : vector<2x324xf32>
    %c0_99 = arith.constant 0 : index
    %c0_100 = arith.constant 0 : index
    %208 = vector.load %arg17[%c0_99, %c0_100] : memref<16x324xf32, #tpu.memory_space<vmem>>, vector<2x324xf32>
    tpu.vector_store %arg17[%c0_99, %c0_100], %207 {strides = array<i32>} : memref<16x324xf32, #tpu.memory_space<vmem>>, vector<2x324xf32>,
    %cst_101 = arith.constant 0.000000e+00 : f32
    %209 = vector.broadcast %cst_101 : f32 to vector<2x338xf32>
    %210 = arith.subf %209, %195 : vector<2x338xf32>
    %211 = arith.addf %210, %197 : vector<2x338xf32>
    %cst_102 = arith.constant 1.000000e-01 : f32
    %212 = vector.broadcast %cst_102 : f32 to vector<2x338xf32>
    %213 = arith.mulf %212, %211 : vector<2x338xf32>
    %214 = arith.addf %195, %213 : vector<2x338xf32>
    %cst_103 = arith.constant 2.000000e-01 : f32
    %215 = vector.broadcast %cst_103 : f32 to vector<2x338xf32>
    %216 = arith.mulf %215, %197 : vector<2x338xf32>
    %217 = arith.subf %197, %216 : vector<2x338xf32>
    %cst_104 = arith.constant 1.000000e+00 : f32
    %218 = vector.broadcast %cst_104 : f32 to vector<2x338xf32>
    %219 = arith.subf %214, %218 : vector<2x338xf32>
    %cst_105 = arith.constant 0.000000e+00 : f32
    %220 = vector.broadcast %cst_105 : f32 to vector<2x338xf32>
    %221 = arith.cmpf ogt, %219, %220 : vector<2x338xf32>
    %222 = arith.extui %221 : vector<2x338xi1> to vector<2x338xi32>
    %223 = arith.sitofp %222 : vector<2x338xi32> to vector<2x338xf32>
    %cst_106 = arith.constant 1.000000e+00 : f32
    %224 = vector.broadcast %cst_106 : f32 to vector<2x338xf32>
    %225 = arith.subf %224, %223 : vector<2x338xf32>
    %226 = arith.mulf %225, %214 : vector<2x338xf32>
    %c2_107 = arith.constant 2 : index
    %c0_108 = arith.constant 0 : index
    %227 = vector.load %arg16[%c2_107, %c0_108] : memref<16x338xf32, #tpu.memory_space<vmem>>, vector<2x338xf32>
    %228 = arith.addf %217, %227 : vector<2x338xf32>
    %c1_109 = arith.constant 1 : index
    %c0_110 = arith.constant 0 : index
    %c0_111 = arith.constant 0 : index
    %229 = vector.load %arg7[%c1_109, %c0_110, %c0_111] : memref<8x2x338xf32, #tpu.memory_space<vmem>>, vector<1x2x338xf32>
    %230 = vector.shape_cast %229 : vector<1x2x338xf32> to vector<2x338xf32>
    %231 = vector.shape_cast %223 : vector<2x338xf32> to vector<1x2x338xf32>
    tpu.vector_store %arg7[%c1_109, %c0_110, %c0_111], %231 {strides = array<i32>} : memref<8x2x338xf32, #tpu.memory_space<vmem>>, vector<1x2x338xf32>,
    %232 = vector.extract_strided_slice %223 {offsets = [0, 0], sizes = [2, 324], strides = [1, 1]} : vector<2x338xf32> to vector<2x324xf32>
    %233 = vector.extract_strided_slice %223 {offsets = [0, 1], sizes = [2, 324], strides = [1, 1]} : vector<2x338xf32> to vector<2x324xf32>
    %234 = vector.extract_strided_slice %223 {offsets = [0, 13], sizes = [2, 324], strides = [1, 1]} : vector<2x338xf32> to vector<2x324xf32>
    %235 = vector.extract_strided_slice %223 {offsets = [0, 14], sizes = [2, 324], strides = [1, 1]} : vector<2x338xf32> to vector<2x324xf32>
    %236 = arith.maximumf %232, %233 : vector<2x324xf32>
    %237 = arith.maximumf %234, %235 : vector<2x324xf32>
    %238 = arith.maximumf %236, %237 : vector<2x324xf32>
    %c2_112 = arith.constant 2 : index
    %c0_113 = arith.constant 0 : index
    %239 = vector.load %arg17[%c2_112, %c0_113] : memref<16x324xf32, #tpu.memory_space<vmem>>, vector<2x324xf32>
    tpu.vector_store %arg17[%c2_112, %c0_113], %238 {strides = array<i32>} : memref<16x324xf32, #tpu.memory_space<vmem>>, vector<2x324xf32>,
    %cst_114 = arith.constant 0.000000e+00 : f32
    %240 = vector.broadcast %cst_114 : f32 to vector<2x338xf32>
    %241 = arith.subf %240, %226 : vector<2x338xf32>
    %242 = arith.addf %241, %228 : vector<2x338xf32>
    %cst_115 = arith.constant 1.000000e-01 : f32
    %243 = vector.broadcast %cst_115 : f32 to vector<2x338xf32>
    %244 = arith.mulf %243, %242 : vector<2x338xf32>
    %245 = arith.addf %226, %244 : vector<2x338xf32>
    %cst_116 = arith.constant 2.000000e-01 : f32
    %246 = vector.broadcast %cst_116 : f32 to vector<2x338xf32>
    %247 = arith.mulf %246, %228 : vector<2x338xf32>
    %248 = arith.subf %228, %247 : vector<2x338xf32>
    %cst_117 = arith.constant 1.000000e+00 : f32
    %249 = vector.broadcast %cst_117 : f32 to vector<2x338xf32>
    %250 = arith.subf %245, %249 : vector<2x338xf32>
    %cst_118 = arith.constant 0.000000e+00 : f32
    %251 = vector.broadcast %cst_118 : f32 to vector<2x338xf32>
    %252 = arith.cmpf ogt, %250, %251 : vector<2x338xf32>
    %253 = arith.extui %252 : vector<2x338xi1> to vector<2x338xi32>
    %254 = arith.sitofp %253 : vector<2x338xi32> to vector<2x338xf32>
    %cst_119 = arith.constant 1.000000e+00 : f32
    %255 = vector.broadcast %cst_119 : f32 to vector<2x338xf32>
    %256 = arith.subf %255, %254 : vector<2x338xf32>
    %257 = arith.mulf %256, %245 : vector<2x338xf32>
    %c4_120 = arith.constant 4 : index
    %c0_121 = arith.constant 0 : index
    %258 = vector.load %arg16[%c4_120, %c0_121] : memref<16x338xf32, #tpu.memory_space<vmem>>, vector<2x338xf32>
    %259 = arith.addf %248, %258 : vector<2x338xf32>
    %c2_122 = arith.constant 2 : index
    %c0_123 = arith.constant 0 : index
    %c0_124 = arith.constant 0 : index
    %260 = vector.load %arg7[%c2_122, %c0_123, %c0_124] : memref<8x2x338xf32, #tpu.memory_space<vmem>>, vector<1x2x338xf32>
    %261 = vector.shape_cast %260 : vector<1x2x338xf32> to vector<2x338xf32>
    %262 = vector.shape_cast %254 : vector<2x338xf32> to vector<1x2x338xf32>
    tpu.vector_store %arg7[%c2_122, %c0_123, %c0_124], %262 {strides = array<i32>} : memref<8x2x338xf32, #tpu.memory_space<vmem>>, vector<1x2x338xf32>,
    %263 = vector.extract_strided_slice %254 {offsets = [0, 0], sizes = [2, 324], strides = [1, 1]} : vector<2x338xf32> to vector<2x324xf32>
    %264 = vector.extract_strided_slice %254 {offsets = [0, 1], sizes = [2, 324], strides = [1, 1]} : vector<2x338xf32> to vector<2x324xf32>
    %265 = vector.extract_strided_slice %254 {offsets = [0, 13], sizes = [2, 324], strides = [1, 1]} : vector<2x338xf32> to vector<2x324xf32>
    %266 = vector.extract_strided_slice %254 {offsets = [0, 14], sizes = [2, 324], strides = [1, 1]} : vector<2x338xf32> to vector<2x324xf32>
    %267 = arith.maximumf %263, %264 : vector<2x324xf32>
    %268 = arith.maximumf %265, %266 : vector<2x324xf32>
    %269 = arith.maximumf %267, %268 : vector<2x324xf32>
    %c4_125 = arith.constant 4 : index
    %c0_126 = arith.constant 0 : index
    %270 = vector.load %arg17[%c4_125, %c0_126] : memref<16x324xf32, #tpu.memory_space<vmem>>, vector<2x324xf32>
    tpu.vector_store %arg17[%c4_125, %c0_126], %269 {strides = array<i32>} : memref<16x324xf32, #tpu.memory_space<vmem>>, vector<2x324xf32>,
    %cst_127 = arith.constant 0.000000e+00 : f32
    %271 = vector.broadcast %cst_127 : f32 to vector<2x338xf32>
    %272 = arith.subf %271, %257 : vector<2x338xf32>
    %273 = arith.addf %272, %259 : vector<2x338xf32>
    %cst_128 = arith.constant 1.000000e-01 : f32
    %274 = vector.broadcast %cst_128 : f32 to vector<2x338xf32>
    %275 = arith.mulf %274, %273 : vector<2x338xf32>
    %276 = arith.addf %257, %275 : vector<2x338xf32>
    %cst_129 = arith.constant 2.000000e-01 : f32
    %277 = vector.broadcast %cst_129 : f32 to vector<2x338xf32>
    %278 = arith.mulf %277, %259 : vector<2x338xf32>
    %279 = arith.subf %259, %278 : vector<2x338xf32>
    %cst_130 = arith.constant 1.000000e+00 : f32
    %280 = vector.broadcast %cst_130 : f32 to vector<2x338xf32>
    %281 = arith.subf %276, %280 : vector<2x338xf32>
    %cst_131 = arith.constant 0.000000e+00 : f32
    %282 = vector.broadcast %cst_131 : f32 to vector<2x338xf32>
    %283 = arith.cmpf ogt, %281, %282 : vector<2x338xf32>
    %284 = arith.extui %283 : vector<2x338xi1> to vector<2x338xi32>
    %285 = arith.sitofp %284 : vector<2x338xi32> to vector<2x338xf32>
    %cst_132 = arith.constant 1.000000e+00 : f32
    %286 = vector.broadcast %cst_132 : f32 to vector<2x338xf32>
    %287 = arith.subf %286, %285 : vector<2x338xf32>
    %288 = arith.mulf %287, %276 : vector<2x338xf32>
    %c6_133 = arith.constant 6 : index
    %c0_134 = arith.constant 0 : index
    %289 = vector.load %arg16[%c6_133, %c0_134] : memref<16x338xf32, #tpu.memory_space<vmem>>, vector<2x338xf32>
    %290 = arith.addf %279, %289 : vector<2x338xf32>
    %c3_135 = arith.constant 3 : index
    %c0_136 = arith.constant 0 : index
    %c0_137 = arith.constant 0 : index
    %291 = vector.load %arg7[%c3_135, %c0_136, %c0_137] : memref<8x2x338xf32, #tpu.memory_space<vmem>>, vector<1x2x338xf32>
    %292 = vector.shape_cast %291 : vector<1x2x338xf32> to vector<2x338xf32>
    %293 = vector.shape_cast %285 : vector<2x338xf32> to vector<1x2x338xf32>
    tpu.vector_store %arg7[%c3_135, %c0_136, %c0_137], %293 {strides = array<i32>} : memref<8x2x338xf32, #tpu.memory_space<vmem>>, vector<1x2x338xf32>,
    %294 = vector.extract_strided_slice %285 {offsets = [0, 0], sizes = [2, 324], strides = [1, 1]} : vector<2x338xf32> to vector<2x324xf32>
    %295 = vector.extract_strided_slice %285 {offsets = [0, 1], sizes = [2, 324], strides = [1, 1]} : vector<2x338xf32> to vector<2x324xf32>
    %296 = vector.extract_strided_slice %285 {offsets = [0, 13], sizes = [2, 324], strides = [1, 1]} : vector<2x338xf32> to vector<2x324xf32>
    %297 = vector.extract_strided_slice %285 {offsets = [0, 14], sizes = [2, 324], strides = [1, 1]} : vector<2x338xf32> to vector<2x324xf32>
    %298 = arith.maximumf %294, %295 : vector<2x324xf32>
    %299 = arith.maximumf %296, %297 : vector<2x324xf32>
    %300 = arith.maximumf %298, %299 : vector<2x324xf32>
    %c6_138 = arith.constant 6 : index
    %c0_139 = arith.constant 0 : index
    %301 = vector.load %arg17[%c6_138, %c0_139] : memref<16x324xf32, #tpu.memory_space<vmem>>, vector<2x324xf32>
    tpu.vector_store %arg17[%c6_138, %c0_139], %300 {strides = array<i32>} : memref<16x324xf32, #tpu.memory_space<vmem>>, vector<2x324xf32>,
    %cst_140 = arith.constant 0.000000e+00 : f32
    %302 = vector.broadcast %cst_140 : f32 to vector<2x338xf32>
    %303 = arith.subf %302, %288 : vector<2x338xf32>
    %304 = arith.addf %303, %290 : vector<2x338xf32>
    %cst_141 = arith.constant 1.000000e-01 : f32
    %305 = vector.broadcast %cst_141 : f32 to vector<2x338xf32>
    %306 = arith.mulf %305, %304 : vector<2x338xf32>
    %307 = arith.addf %288, %306 : vector<2x338xf32>
    %cst_142 = arith.constant 2.000000e-01 : f32
    %308 = vector.broadcast %cst_142 : f32 to vector<2x338xf32>
    %309 = arith.mulf %308, %290 : vector<2x338xf32>
    %310 = arith.subf %290, %309 : vector<2x338xf32>
    %cst_143 = arith.constant 1.000000e+00 : f32
    %311 = vector.broadcast %cst_143 : f32 to vector<2x338xf32>
    %312 = arith.subf %307, %311 : vector<2x338xf32>
    %cst_144 = arith.constant 0.000000e+00 : f32
    %313 = vector.broadcast %cst_144 : f32 to vector<2x338xf32>
    %314 = arith.cmpf ogt, %312, %313 : vector<2x338xf32>
    %315 = arith.extui %314 : vector<2x338xi1> to vector<2x338xi32>
    %316 = arith.sitofp %315 : vector<2x338xi32> to vector<2x338xf32>
    %cst_145 = arith.constant 1.000000e+00 : f32
    %317 = vector.broadcast %cst_145 : f32 to vector<2x338xf32>
    %318 = arith.subf %317, %316 : vector<2x338xf32>
    %319 = arith.mulf %318, %307 : vector<2x338xf32>
    %c8_146 = arith.constant 8 : index
    %c0_147 = arith.constant 0 : index
    %320 = vector.load %arg16[%c8_146, %c0_147] : memref<16x338xf32, #tpu.memory_space<vmem>>, vector<2x338xf32>
    %321 = arith.addf %310, %320 : vector<2x338xf32>
    %c4_148 = arith.constant 4 : index
    %c0_149 = arith.constant 0 : index
    %c0_150 = arith.constant 0 : index
    %322 = vector.load %arg7[%c4_148, %c0_149, %c0_150] : memref<8x2x338xf32, #tpu.memory_space<vmem>>, vector<1x2x338xf32>
    %323 = vector.shape_cast %322 : vector<1x2x338xf32> to vector<2x338xf32>
    %324 = vector.shape_cast %316 : vector<2x338xf32> to vector<1x2x338xf32>
    tpu.vector_store %arg7[%c4_148, %c0_149, %c0_150], %324 {strides = array<i32>} : memref<8x2x338xf32, #tpu.memory_space<vmem>>, vector<1x2x338xf32>,
    %325 = vector.extract_strided_slice %316 {offsets = [0, 0], sizes = [2, 324], strides = [1, 1]} : vector<2x338xf32> to vector<2x324xf32>
    %326 = vector.extract_strided_slice %316 {offsets = [0, 1], sizes = [2, 324], strides = [1, 1]} : vector<2x338xf32> to vector<2x324xf32>
    %327 = vector.extract_strided_slice %316 {offsets = [0, 13], sizes = [2, 324], strides = [1, 1]} : vector<2x338xf32> to vector<2x324xf32>
    %328 = vector.extract_strided_slice %316 {offsets = [0, 14], sizes = [2, 324], strides = [1, 1]} : vector<2x338xf32> to vector<2x324xf32>
    %329 = arith.maximumf %325, %326 : vector<2x324xf32>
    %330 = arith.maximumf %327, %328 : vector<2x324xf32>
    %331 = arith.maximumf %329, %330 : vector<2x324xf32>
    %c8_151 = arith.constant 8 : index
    %c0_152 = arith.constant 0 : index
    %332 = vector.load %arg17[%c8_151, %c0_152] : memref<16x324xf32, #tpu.memory_space<vmem>>, vector<2x324xf32>
    tpu.vector_store %arg17[%c8_151, %c0_152], %331 {strides = array<i32>} : memref<16x324xf32, #tpu.memory_space<vmem>>, vector<2x324xf32>,
    %cst_153 = arith.constant 0.000000e+00 : f32
    %333 = vector.broadcast %cst_153 : f32 to vector<2x338xf32>
    %334 = arith.subf %333, %319 : vector<2x338xf32>
    %335 = arith.addf %334, %321 : vector<2x338xf32>
    %cst_154 = arith.constant 1.000000e-01 : f32
    %336 = vector.broadcast %cst_154 : f32 to vector<2x338xf32>
    %337 = arith.mulf %336, %335 : vector<2x338xf32>
    %338 = arith.addf %319, %337 : vector<2x338xf32>
    %cst_155 = arith.constant 2.000000e-01 : f32
    %339 = vector.broadcast %cst_155 : f32 to vector<2x338xf32>
    %340 = arith.mulf %339, %321 : vector<2x338xf32>
    %341 = arith.subf %321, %340 : vector<2x338xf32>
    %cst_156 = arith.constant 1.000000e+00 : f32
    %342 = vector.broadcast %cst_156 : f32 to vector<2x338xf32>
    %343 = arith.subf %338, %342 : vector<2x338xf32>
    %cst_157 = arith.constant 0.000000e+00 : f32
    %344 = vector.broadcast %cst_157 : f32 to vector<2x338xf32>
    %345 = arith.cmpf ogt, %343, %344 : vector<2x338xf32>
    %346 = arith.extui %345 : vector<2x338xi1> to vector<2x338xi32>
    %347 = arith.sitofp %346 : vector<2x338xi32> to vector<2x338xf32>
    %cst_158 = arith.constant 1.000000e+00 : f32
    %348 = vector.broadcast %cst_158 : f32 to vector<2x338xf32>
    %349 = arith.subf %348, %347 : vector<2x338xf32>
    %350 = arith.mulf %349, %338 : vector<2x338xf32>
    %c10_159 = arith.constant 10 : index
    %c0_160 = arith.constant 0 : index
    %351 = vector.load %arg16[%c10_159, %c0_160] : memref<16x338xf32, #tpu.memory_space<vmem>>, vector<2x338xf32>
    %352 = arith.addf %341, %351 : vector<2x338xf32>
    %c5_161 = arith.constant 5 : index
    %c0_162 = arith.constant 0 : index
    %c0_163 = arith.constant 0 : index
    %353 = vector.load %arg7[%c5_161, %c0_162, %c0_163] : memref<8x2x338xf32, #tpu.memory_space<vmem>>, vector<1x2x338xf32>
    %354 = vector.shape_cast %353 : vector<1x2x338xf32> to vector<2x338xf32>
    %355 = vector.shape_cast %347 : vector<2x338xf32> to vector<1x2x338xf32>
    tpu.vector_store %arg7[%c5_161, %c0_162, %c0_163], %355 {strides = array<i32>} : memref<8x2x338xf32, #tpu.memory_space<vmem>>, vector<1x2x338xf32>,
    %356 = vector.extract_strided_slice %347 {offsets = [0, 0], sizes = [2, 324], strides = [1, 1]} : vector<2x338xf32> to vector<2x324xf32>
    %357 = vector.extract_strided_slice %347 {offsets = [0, 1], sizes = [2, 324], strides = [1, 1]} : vector<2x338xf32> to vector<2x324xf32>
    %358 = vector.extract_strided_slice %347 {offsets = [0, 13], sizes = [2, 324], strides = [1, 1]} : vector<2x338xf32> to vector<2x324xf32>
    %359 = vector.extract_strided_slice %347 {offsets = [0, 14], sizes = [2, 324], strides = [1, 1]} : vector<2x338xf32> to vector<2x324xf32>
    %360 = arith.maximumf %356, %357 : vector<2x324xf32>
    %361 = arith.maximumf %358, %359 : vector<2x324xf32>
    %362 = arith.maximumf %360, %361 : vector<2x324xf32>
    %c10_164 = arith.constant 10 : index
    %c0_165 = arith.constant 0 : index
    %363 = vector.load %arg17[%c10_164, %c0_165] : memref<16x324xf32, #tpu.memory_space<vmem>>, vector<2x324xf32>
    tpu.vector_store %arg17[%c10_164, %c0_165], %362 {strides = array<i32>} : memref<16x324xf32, #tpu.memory_space<vmem>>, vector<2x324xf32>,
    %cst_166 = arith.constant 0.000000e+00 : f32
    %364 = vector.broadcast %cst_166 : f32 to vector<2x338xf32>
    %365 = arith.subf %364, %350 : vector<2x338xf32>
    %366 = arith.addf %365, %352 : vector<2x338xf32>
    %cst_167 = arith.constant 1.000000e-01 : f32
    %367 = vector.broadcast %cst_167 : f32 to vector<2x338xf32>
    %368 = arith.mulf %367, %366 : vector<2x338xf32>
    %369 = arith.addf %350, %368 : vector<2x338xf32>
    %cst_168 = arith.constant 2.000000e-01 : f32
    %370 = vector.broadcast %cst_168 : f32 to vector<2x338xf32>
    %371 = arith.mulf %370, %352 : vector<2x338xf32>
    %372 = arith.subf %352, %371 : vector<2x338xf32>
    %cst_169 = arith.constant 1.000000e+00 : f32
    %373 = vector.broadcast %cst_169 : f32 to vector<2x338xf32>
    %374 = arith.subf %369, %373 : vector<2x338xf32>
    %cst_170 = arith.constant 0.000000e+00 : f32
    %375 = vector.broadcast %cst_170 : f32 to vector<2x338xf32>
    %376 = arith.cmpf ogt, %374, %375 : vector<2x338xf32>
    %377 = arith.extui %376 : vector<2x338xi1> to vector<2x338xi32>
    %378 = arith.sitofp %377 : vector<2x338xi32> to vector<2x338xf32>
    %cst_171 = arith.constant 1.000000e+00 : f32
    %379 = vector.broadcast %cst_171 : f32 to vector<2x338xf32>
    %380 = arith.subf %379, %378 : vector<2x338xf32>
    %381 = arith.mulf %380, %369 : vector<2x338xf32>
    %c12_172 = arith.constant 12 : index
    %c0_173 = arith.constant 0 : index
    %382 = vector.load %arg16[%c12_172, %c0_173] : memref<16x338xf32, #tpu.memory_space<vmem>>, vector<2x338xf32>
    %383 = arith.addf %372, %382 : vector<2x338xf32>
    %c6_174 = arith.constant 6 : index
    %c0_175 = arith.constant 0 : index
    %c0_176 = arith.constant 0 : index
    %384 = vector.load %arg7[%c6_174, %c0_175, %c0_176] : memref<8x2x338xf32, #tpu.memory_space<vmem>>, vector<1x2x338xf32>
    %385 = vector.shape_cast %384 : vector<1x2x338xf32> to vector<2x338xf32>
    %386 = vector.shape_cast %378 : vector<2x338xf32> to vector<1x2x338xf32>
    tpu.vector_store %arg7[%c6_174, %c0_175, %c0_176], %386 {strides = array<i32>} : memref<8x2x338xf32, #tpu.memory_space<vmem>>, vector<1x2x338xf32>,
    %387 = vector.extract_strided_slice %378 {offsets = [0, 0], sizes = [2, 324], strides = [1, 1]} : vector<2x338xf32> to vector<2x324xf32>
    %388 = vector.extract_strided_slice %378 {offsets = [0, 1], sizes = [2, 324], strides = [1, 1]} : vector<2x338xf32> to vector<2x324xf32>
    %389 = vector.extract_strided_slice %378 {offsets = [0, 13], sizes = [2, 324], strides = [1, 1]} : vector<2x338xf32> to vector<2x324xf32>
    %390 = vector.extract_strided_slice %378 {offsets = [0, 14], sizes = [2, 324], strides = [1, 1]} : vector<2x338xf32> to vector<2x324xf32>
    %391 = arith.maximumf %387, %388 : vector<2x324xf32>
    %392 = arith.maximumf %389, %390 : vector<2x324xf32>
    %393 = arith.maximumf %391, %392 : vector<2x324xf32>
    %c12_177 = arith.constant 12 : index
    %c0_178 = arith.constant 0 : index
    %394 = vector.load %arg17[%c12_177, %c0_178] : memref<16x324xf32, #tpu.memory_space<vmem>>, vector<2x324xf32>
    tpu.vector_store %arg17[%c12_177, %c0_178], %393 {strides = array<i32>} : memref<16x324xf32, #tpu.memory_space<vmem>>, vector<2x324xf32>,
    %cst_179 = arith.constant 0.000000e+00 : f32
    %395 = vector.broadcast %cst_179 : f32 to vector<2x338xf32>
    %396 = arith.subf %395, %381 : vector<2x338xf32>
    %397 = arith.addf %396, %383 : vector<2x338xf32>
    %cst_180 = arith.constant 1.000000e-01 : f32
    %398 = vector.broadcast %cst_180 : f32 to vector<2x338xf32>
    %399 = arith.mulf %398, %397 : vector<2x338xf32>
    %400 = arith.addf %381, %399 : vector<2x338xf32>
    %cst_181 = arith.constant 2.000000e-01 : f32
    %401 = vector.broadcast %cst_181 : f32 to vector<2x338xf32>
    %402 = arith.mulf %401, %383 : vector<2x338xf32>
    %403 = arith.subf %383, %402 : vector<2x338xf32>
    %cst_182 = arith.constant 1.000000e+00 : f32
    %404 = vector.broadcast %cst_182 : f32 to vector<2x338xf32>
    %405 = arith.subf %400, %404 : vector<2x338xf32>
    %cst_183 = arith.constant 0.000000e+00 : f32
    %406 = vector.broadcast %cst_183 : f32 to vector<2x338xf32>
    %407 = arith.cmpf ogt, %405, %406 : vector<2x338xf32>
    %408 = arith.extui %407 : vector<2x338xi1> to vector<2x338xi32>
    %409 = arith.sitofp %408 : vector<2x338xi32> to vector<2x338xf32>
    %cst_184 = arith.constant 1.000000e+00 : f32
    %410 = vector.broadcast %cst_184 : f32 to vector<2x338xf32>
    %411 = arith.subf %410, %409 : vector<2x338xf32>
    %412 = arith.mulf %411, %400 : vector<2x338xf32>
    %c14_185 = arith.constant 14 : index
    %c0_186 = arith.constant 0 : index
    %413 = vector.load %arg16[%c14_185, %c0_186] : memref<16x338xf32, #tpu.memory_space<vmem>>, vector<2x338xf32>
    %414 = arith.addf %403, %413 : vector<2x338xf32>
    %c7_187 = arith.constant 7 : index
    %c0_188 = arith.constant 0 : index
    %c0_189 = arith.constant 0 : index
    %415 = vector.load %arg7[%c7_187, %c0_188, %c0_189] : memref<8x2x338xf32, #tpu.memory_space<vmem>>, vector<1x2x338xf32>
    %416 = vector.shape_cast %415 : vector<1x2x338xf32> to vector<2x338xf32>
    %417 = vector.shape_cast %409 : vector<2x338xf32> to vector<1x2x338xf32>
    tpu.vector_store %arg7[%c7_187, %c0_188, %c0_189], %417 {strides = array<i32>} : memref<8x2x338xf32, #tpu.memory_space<vmem>>, vector<1x2x338xf32>,
    %418 = vector.extract_strided_slice %409 {offsets = [0, 0], sizes = [2, 324], strides = [1, 1]} : vector<2x338xf32> to vector<2x324xf32>
    %419 = vector.extract_strided_slice %409 {offsets = [0, 1], sizes = [2, 324], strides = [1, 1]} : vector<2x338xf32> to vector<2x324xf32>
    %420 = vector.extract_strided_slice %409 {offsets = [0, 13], sizes = [2, 324], strides = [1, 1]} : vector<2x338xf32> to vector<2x324xf32>
    %421 = vector.extract_strided_slice %409 {offsets = [0, 14], sizes = [2, 324], strides = [1, 1]} : vector<2x338xf32> to vector<2x324xf32>
    %422 = arith.maximumf %418, %419 : vector<2x324xf32>
    %423 = arith.maximumf %420, %421 : vector<2x324xf32>
    %424 = arith.maximumf %422, %423 : vector<2x324xf32>
    %c14_190 = arith.constant 14 : index
    %c0_191 = arith.constant 0 : index
    %425 = vector.load %arg17[%c14_190, %c0_191] : memref<16x324xf32, #tpu.memory_space<vmem>>, vector<2x324xf32>
    tpu.vector_store %arg17[%c14_190, %c0_191], %424 {strides = array<i32>} : memref<16x324xf32, #tpu.memory_space<vmem>>, vector<2x324xf32>,
    %c0_192 = arith.constant 0 : index
    %c0_193 = arith.constant 0 : index
    %426 = vector.load %arg11[%c0_192, %c0_193] : memref<2x338xf32, #tpu.memory_space<vmem>>, vector<2x338xf32>
    tpu.vector_store %arg11[%c0_192, %c0_193], %412 {strides = array<i32>} : memref<2x338xf32, #tpu.memory_space<vmem>>, vector<2x338xf32>,
    %c0_194 = arith.constant 0 : index
    %c0_195 = arith.constant 0 : index
    %427 = vector.load %arg12[%c0_194, %c0_195] : memref<2x338xf32, #tpu.memory_space<vmem>>, vector<2x338xf32>
    tpu.vector_store %arg12[%c0_194, %c0_195], %414 {strides = array<i32>} : memref<2x338xf32, #tpu.memory_space<vmem>>, vector<2x338xf32>,
    %c0_196 = arith.constant 0 : index
    %c0_197 = arith.constant 0 : index
    %428 = vector.load %arg17[%c0_196, %c0_197] : memref<16x324xf32, #tpu.memory_space<vmem>>, vector<16x324xf32>
    %429 = arith.truncf %428 : vector<16x324xf32> to vector<16x324xbf16>
    %c0_198 = arith.constant 0 : index
    %c0_199 = arith.constant 0 : index
    %430 = vector.load %arg4[%c0_198, %c0_199] : memref<324x10xbf16, #tpu.memory_space<vmem>>, vector<324x10xbf16>
    %cst_200 = arith.constant dense<0.000000e+00> : vector<16x10xf32>
    %431 = tpu.matmul %429, %430, %cst_200 {dimension_numbers = #tpu.dot_dimension_numbers<[1], [0], [0], [1], [0, 0, 1, 1], [], []>} : vector<16x324xbf16>, vector<324x10xbf16>, vector<16x10xf32> -> vector<16x10xf32>
    %c0_201 = arith.constant 0 : index
    %c0_202 = arith.constant 0 : index
    %432 = vector.load %arg5[%c0_201, %c0_202] : memref<1x10xf32, #tpu.memory_space<vmem>>, vector<1x10xf32>
    %433 = vector.broadcast %432 : vector<1x10xf32> to vector<16x10xf32>
    %434 = arith.addf %431, %433 : vector<16x10xf32>
    %c0_203 = arith.constant 0 : index
    %c0_204 = arith.constant 0 : index
    %435 = vector.load %arg18[%c0_203, %c0_204] : memref<16x10xf32, #tpu.memory_space<vmem>>, vector<16x10xf32>
    tpu.vector_store %arg18[%c0_203, %c0_204], %434 {strides = array<i32>} : memref<16x10xf32, #tpu.memory_space<vmem>>, vector<16x10xf32>,
    %c0_205 = arith.constant 0 : index
    %c0_206 = arith.constant 0 : index
    %436 = vector.load %arg13[%c0_205, %c0_206] : memref<2x10xf32, #tpu.memory_space<vmem>>, vector<2x10xf32>
    %c0_207 = arith.constant 0 : index
    %c0_208 = arith.constant 0 : index
    %437 = vector.load %arg14[%c0_207, %c0_208] : memref<2x10xf32, #tpu.memory_space<vmem>>, vector<2x10xf32>
    %cst_209 = arith.constant 0.000000e+00 : f32
    %438 = vector.broadcast %cst_209 : f32 to vector<2x10xf32>
    %c0_210 = arith.constant 0 : index
    %c0_211 = arith.constant 0 : index
    %439 = vector.load %arg18[%c0_210, %c0_211] : memref<16x10xf32, #tpu.memory_space<vmem>>, vector<2x10xf32>
    %440 = arith.addf %437, %439 : vector<2x10xf32>
    %cst_212 = arith.constant 0.000000e+00 : f32
    %441 = vector.broadcast %cst_212 : f32 to vector<2x10xf32>
    %442 = arith.subf %441, %436 : vector<2x10xf32>
    %443 = arith.addf %442, %440 : vector<2x10xf32>
    %cst_213 = arith.constant 1.000000e-01 : f32
    %444 = vector.broadcast %cst_213 : f32 to vector<2x10xf32>
    %445 = arith.mulf %444, %443 : vector<2x10xf32>
    %446 = arith.addf %436, %445 : vector<2x10xf32>
    %cst_214 = arith.constant 2.000000e-01 : f32
    %447 = vector.broadcast %cst_214 : f32 to vector<2x10xf32>
    %448 = arith.mulf %447, %440 : vector<2x10xf32>
    %449 = arith.subf %440, %448 : vector<2x10xf32>
    %c0_215 = arith.constant 0 : index
    %c0_216 = arith.constant 0 : index
    %c0_217 = arith.constant 0 : index
    %450 = vector.load %arg8[%c0_215, %c0_216, %c0_217] : memref<8x2x10xf32, #tpu.memory_space<vmem>>, vector<1x2x10xf32>
    %451 = vector.shape_cast %450 : vector<1x2x10xf32> to vector<2x10xf32>
    %452 = vector.shape_cast %446 : vector<2x10xf32> to vector<1x2x10xf32>
    tpu.vector_store %arg8[%c0_215, %c0_216, %c0_217], %452 {strides = array<i32>} : memref<8x2x10xf32, #tpu.memory_space<vmem>>, vector<1x2x10xf32>,
    %453 = arith.addf %438, %446 : vector<2x10xf32>
    %c2_218 = arith.constant 2 : index
    %c0_219 = arith.constant 0 : index
    %454 = vector.load %arg18[%c2_218, %c0_219] : memref<16x10xf32, #tpu.memory_space<vmem>>, vector<2x10xf32>
    %455 = arith.addf %449, %454 : vector<2x10xf32>
    %cst_220 = arith.constant 0.000000e+00 : f32
    %456 = vector.broadcast %cst_220 : f32 to vector<2x10xf32>
    %457 = arith.subf %456, %446 : vector<2x10xf32>
    %458 = arith.addf %457, %455 : vector<2x10xf32>
    %cst_221 = arith.constant 1.000000e-01 : f32
    %459 = vector.broadcast %cst_221 : f32 to vector<2x10xf32>
    %460 = arith.mulf %459, %458 : vector<2x10xf32>
    %461 = arith.addf %446, %460 : vector<2x10xf32>
    %cst_222 = arith.constant 2.000000e-01 : f32
    %462 = vector.broadcast %cst_222 : f32 to vector<2x10xf32>
    %463 = arith.mulf %462, %455 : vector<2x10xf32>
    %464 = arith.subf %455, %463 : vector<2x10xf32>
    %c1_223 = arith.constant 1 : index
    %c0_224 = arith.constant 0 : index
    %c0_225 = arith.constant 0 : index
    %465 = vector.load %arg8[%c1_223, %c0_224, %c0_225] : memref<8x2x10xf32, #tpu.memory_space<vmem>>, vector<1x2x10xf32>
    %466 = vector.shape_cast %465 : vector<1x2x10xf32> to vector<2x10xf32>
    %467 = vector.shape_cast %461 : vector<2x10xf32> to vector<1x2x10xf32>
    tpu.vector_store %arg8[%c1_223, %c0_224, %c0_225], %467 {strides = array<i32>} : memref<8x2x10xf32, #tpu.memory_space<vmem>>, vector<1x2x10xf32>,
    %468 = arith.addf %453, %461 : vector<2x10xf32>
    %c4_226 = arith.constant 4 : index
    %c0_227 = arith.constant 0 : index
    %469 = vector.load %arg18[%c4_226, %c0_227] : memref<16x10xf32, #tpu.memory_space<vmem>>, vector<2x10xf32>
    %470 = arith.addf %464, %469 : vector<2x10xf32>
    %cst_228 = arith.constant 0.000000e+00 : f32
    %471 = vector.broadcast %cst_228 : f32 to vector<2x10xf32>
    %472 = arith.subf %471, %461 : vector<2x10xf32>
    %473 = arith.addf %472, %470 : vector<2x10xf32>
    %cst_229 = arith.constant 1.000000e-01 : f32
    %474 = vector.broadcast %cst_229 : f32 to vector<2x10xf32>
    %475 = arith.mulf %474, %473 : vector<2x10xf32>
    %476 = arith.addf %461, %475 : vector<2x10xf32>
    %cst_230 = arith.constant 2.000000e-01 : f32
    %477 = vector.broadcast %cst_230 : f32 to vector<2x10xf32>
    %478 = arith.mulf %477, %470 : vector<2x10xf32>
    %479 = arith.subf %470, %478 : vector<2x10xf32>
    %c2_231 = arith.constant 2 : index
    %c0_232 = arith.constant 0 : index
    %c0_233 = arith.constant 0 : index
    %480 = vector.load %arg8[%c2_231, %c0_232, %c0_233] : memref<8x2x10xf32, #tpu.memory_space<vmem>>, vector<1x2x10xf32>
    %481 = vector.shape_cast %480 : vector<1x2x10xf32> to vector<2x10xf32>
    %482 = vector.shape_cast %476 : vector<2x10xf32> to vector<1x2x10xf32>
    tpu.vector_store %arg8[%c2_231, %c0_232, %c0_233], %482 {strides = array<i32>} : memref<8x2x10xf32, #tpu.memory_space<vmem>>, vector<1x2x10xf32>,
    %483 = arith.addf %468, %476 : vector<2x10xf32>
    %c6_234 = arith.constant 6 : index
    %c0_235 = arith.constant 0 : index
    %484 = vector.load %arg18[%c6_234, %c0_235] : memref<16x10xf32, #tpu.memory_space<vmem>>, vector<2x10xf32>
    %485 = arith.addf %479, %484 : vector<2x10xf32>
    %cst_236 = arith.constant 0.000000e+00 : f32
    %486 = vector.broadcast %cst_236 : f32 to vector<2x10xf32>
    %487 = arith.subf %486, %476 : vector<2x10xf32>
    %488 = arith.addf %487, %485 : vector<2x10xf32>
    %cst_237 = arith.constant 1.000000e-01 : f32
    %489 = vector.broadcast %cst_237 : f32 to vector<2x10xf32>
    %490 = arith.mulf %489, %488 : vector<2x10xf32>
    %491 = arith.addf %476, %490 : vector<2x10xf32>
    %cst_238 = arith.constant 2.000000e-01 : f32
    %492 = vector.broadcast %cst_238 : f32 to vector<2x10xf32>
    %493 = arith.mulf %492, %485 : vector<2x10xf32>
    %494 = arith.subf %485, %493 : vector<2x10xf32>
    %c3_239 = arith.constant 3 : index
    %c0_240 = arith.constant 0 : index
    %c0_241 = arith.constant 0 : index
    %495 = vector.load %arg8[%c3_239, %c0_240, %c0_241] : memref<8x2x10xf32, #tpu.memory_space<vmem>>, vector<1x2x10xf32>
    %496 = vector.shape_cast %495 : vector<1x2x10xf32> to vector<2x10xf32>
    %497 = vector.shape_cast %491 : vector<2x10xf32> to vector<1x2x10xf32>
    tpu.vector_store %arg8[%c3_239, %c0_240, %c0_241], %497 {strides = array<i32>} : memref<8x2x10xf32, #tpu.memory_space<vmem>>, vector<1x2x10xf32>,
    %498 = arith.addf %483, %491 : vector<2x10xf32>
    %c8_242 = arith.constant 8 : index
    %c0_243 = arith.constant 0 : index
    %499 = vector.load %arg18[%c8_242, %c0_243] : memref<16x10xf32, #tpu.memory_space<vmem>>, vector<2x10xf32>
    %500 = arith.addf %494, %499 : vector<2x10xf32>
    %cst_244 = arith.constant 0.000000e+00 : f32
    %501 = vector.broadcast %cst_244 : f32 to vector<2x10xf32>
    %502 = arith.subf %501, %491 : vector<2x10xf32>
    %503 = arith.addf %502, %500 : vector<2x10xf32>
    %cst_245 = arith.constant 1.000000e-01 : f32
    %504 = vector.broadcast %cst_245 : f32 to vector<2x10xf32>
    %505 = arith.mulf %504, %503 : vector<2x10xf32>
    %506 = arith.addf %491, %505 : vector<2x10xf32>
    %cst_246 = arith.constant 2.000000e-01 : f32
    %507 = vector.broadcast %cst_246 : f32 to vector<2x10xf32>
    %508 = arith.mulf %507, %500 : vector<2x10xf32>
    %509 = arith.subf %500, %508 : vector<2x10xf32>
    %c4_247 = arith.constant 4 : index
    %c0_248 = arith.constant 0 : index
    %c0_249 = arith.constant 0 : index
    %510 = vector.load %arg8[%c4_247, %c0_248, %c0_249] : memref<8x2x10xf32, #tpu.memory_space<vmem>>, vector<1x2x10xf32>
    %511 = vector.shape_cast %510 : vector<1x2x10xf32> to vector<2x10xf32>
    %512 = vector.shape_cast %506 : vector<2x10xf32> to vector<1x2x10xf32>
    tpu.vector_store %arg8[%c4_247, %c0_248, %c0_249], %512 {strides = array<i32>} : memref<8x2x10xf32, #tpu.memory_space<vmem>>, vector<1x2x10xf32>,
    %513 = arith.addf %498, %506 : vector<2x10xf32>
    %c10_250 = arith.constant 10 : index
    %c0_251 = arith.constant 0 : index
    %514 = vector.load %arg18[%c10_250, %c0_251] : memref<16x10xf32, #tpu.memory_space<vmem>>, vector<2x10xf32>
    %515 = arith.addf %509, %514 : vector<2x10xf32>
    %cst_252 = arith.constant 0.000000e+00 : f32
    %516 = vector.broadcast %cst_252 : f32 to vector<2x10xf32>
    %517 = arith.subf %516, %506 : vector<2x10xf32>
    %518 = arith.addf %517, %515 : vector<2x10xf32>
    %cst_253 = arith.constant 1.000000e-01 : f32
    %519 = vector.broadcast %cst_253 : f32 to vector<2x10xf32>
    %520 = arith.mulf %519, %518 : vector<2x10xf32>
    %521 = arith.addf %506, %520 : vector<2x10xf32>
    %cst_254 = arith.constant 2.000000e-01 : f32
    %522 = vector.broadcast %cst_254 : f32 to vector<2x10xf32>
    %523 = arith.mulf %522, %515 : vector<2x10xf32>
    %524 = arith.subf %515, %523 : vector<2x10xf32>
    %c5_255 = arith.constant 5 : index
    %c0_256 = arith.constant 0 : index
    %c0_257 = arith.constant 0 : index
    %525 = vector.load %arg8[%c5_255, %c0_256, %c0_257] : memref<8x2x10xf32, #tpu.memory_space<vmem>>, vector<1x2x10xf32>
    %526 = vector.shape_cast %525 : vector<1x2x10xf32> to vector<2x10xf32>
    %527 = vector.shape_cast %521 : vector<2x10xf32> to vector<1x2x10xf32>
    tpu.vector_store %arg8[%c5_255, %c0_256, %c0_257], %527 {strides = array<i32>} : memref<8x2x10xf32, #tpu.memory_space<vmem>>, vector<1x2x10xf32>,
    %528 = arith.addf %513, %521 : vector<2x10xf32>
    %c12_258 = arith.constant 12 : index
    %c0_259 = arith.constant 0 : index
    %529 = vector.load %arg18[%c12_258, %c0_259] : memref<16x10xf32, #tpu.memory_space<vmem>>, vector<2x10xf32>
    %530 = arith.addf %524, %529 : vector<2x10xf32>
    %cst_260 = arith.constant 0.000000e+00 : f32
    %531 = vector.broadcast %cst_260 : f32 to vector<2x10xf32>
    %532 = arith.subf %531, %521 : vector<2x10xf32>
    %533 = arith.addf %532, %530 : vector<2x10xf32>
    %cst_261 = arith.constant 1.000000e-01 : f32
    %534 = vector.broadcast %cst_261 : f32 to vector<2x10xf32>
    %535 = arith.mulf %534, %533 : vector<2x10xf32>
    %536 = arith.addf %521, %535 : vector<2x10xf32>
    %cst_262 = arith.constant 2.000000e-01 : f32
    %537 = vector.broadcast %cst_262 : f32 to vector<2x10xf32>
    %538 = arith.mulf %537, %530 : vector<2x10xf32>
    %539 = arith.subf %530, %538 : vector<2x10xf32>
    %c6_263 = arith.constant 6 : index
    %c0_264 = arith.constant 0 : index
    %c0_265 = arith.constant 0 : index
    %540 = vector.load %arg8[%c6_263, %c0_264, %c0_265] : memref<8x2x10xf32, #tpu.memory_space<vmem>>, vector<1x2x10xf32>
    %541 = vector.shape_cast %540 : vector<1x2x10xf32> to vector<2x10xf32>
    %542 = vector.shape_cast %536 : vector<2x10xf32> to vector<1x2x10xf32>
    tpu.vector_store %arg8[%c6_263, %c0_264, %c0_265], %542 {strides = array<i32>} : memref<8x2x10xf32, #tpu.memory_space<vmem>>, vector<1x2x10xf32>,
    %543 = arith.addf %528, %536 : vector<2x10xf32>
    %c14_266 = arith.constant 14 : index
    %c0_267 = arith.constant 0 : index
    %544 = vector.load %arg18[%c14_266, %c0_267] : memref<16x10xf32, #tpu.memory_space<vmem>>, vector<2x10xf32>
    %545 = arith.addf %539, %544 : vector<2x10xf32>
    %cst_268 = arith.constant 0.000000e+00 : f32
    %546 = vector.broadcast %cst_268 : f32 to vector<2x10xf32>
    %547 = arith.subf %546, %536 : vector<2x10xf32>
    %548 = arith.addf %547, %545 : vector<2x10xf32>
    %cst_269 = arith.constant 1.000000e-01 : f32
    %549 = vector.broadcast %cst_269 : f32 to vector<2x10xf32>
    %550 = arith.mulf %549, %548 : vector<2x10xf32>
    %551 = arith.addf %536, %550 : vector<2x10xf32>
    %cst_270 = arith.constant 2.000000e-01 : f32
    %552 = vector.broadcast %cst_270 : f32 to vector<2x10xf32>
    %553 = arith.mulf %552, %545 : vector<2x10xf32>
    %554 = arith.subf %545, %553 : vector<2x10xf32>
    %c7_271 = arith.constant 7 : index
    %c0_272 = arith.constant 0 : index
    %c0_273 = arith.constant 0 : index
    %555 = vector.load %arg8[%c7_271, %c0_272, %c0_273] : memref<8x2x10xf32, #tpu.memory_space<vmem>>, vector<1x2x10xf32>
    %556 = vector.shape_cast %555 : vector<1x2x10xf32> to vector<2x10xf32>
    %557 = vector.shape_cast %551 : vector<2x10xf32> to vector<1x2x10xf32>
    tpu.vector_store %arg8[%c7_271, %c0_272, %c0_273], %557 {strides = array<i32>} : memref<8x2x10xf32, #tpu.memory_space<vmem>>, vector<1x2x10xf32>,
    %558 = arith.addf %543, %551 : vector<2x10xf32>
    %c0_274 = arith.constant 0 : index
    %c0_275 = arith.constant 0 : index
    %559 = vector.load %arg13[%c0_274, %c0_275] : memref<2x10xf32, #tpu.memory_space<vmem>>, vector<2x10xf32>
    tpu.vector_store %arg13[%c0_274, %c0_275], %551 {strides = array<i32>} : memref<2x10xf32, #tpu.memory_space<vmem>>, vector<2x10xf32>,
    %c0_276 = arith.constant 0 : index
    %c0_277 = arith.constant 0 : index
    %560 = vector.load %arg14[%c0_276, %c0_277] : memref<2x10xf32, #tpu.memory_space<vmem>>, vector<2x10xf32>
    tpu.vector_store %arg14[%c0_276, %c0_277], %554 {strides = array<i32>} : memref<2x10xf32, #tpu.memory_space<vmem>>, vector<2x10xf32>,
    %c0_278 = arith.constant 0 : index
    %c0_279 = arith.constant 0 : index
    %561 = vector.load %arg6[%c0_278, %c0_279] : memref<2x10xf32, #tpu.memory_space<vmem>>, vector<2x10xf32>
    %562 = arith.addf %561, %558 : vector<2x10xf32>
    %c0_280 = arith.constant 0 : index
    %c0_281 = arith.constant 0 : index
    %563 = vector.load %arg6[%c0_280, %c0_281] : memref<2x10xf32, #tpu.memory_space<vmem>>, vector<2x10xf32>
    tpu.vector_store %arg6[%c0_280, %c0_281], %562 {strides = array<i32>} : memref<2x10xf32, #tpu.memory_space<vmem>>, vector<2x10xf32>,
    %c0_i32_282 = arith.constant 0 : i32
    %564 = arith.cmpi eq, %arg0, %c0_i32_282 : i32
    %565 = arith.extui %564 : i1 to i32
    %c0_i32_283 = arith.constant 0 : i32
    %566 = arith.cmpi ne, %565, %c0_i32_283 : i32
    scf.if %566 {
      %c0_284 = arith.constant 0 : index
      %c0_285 = arith.constant 0 : index
      %567 = vector.load %arg6[%c0_284, %c0_285] : memref<2x10xf32, #tpu.memory_space<vmem>>, vector<2x10xf32>
      %cst_286 = arith.constant 1.250000e-01 : f32
      %568 = vector.broadcast %cst_286 : f32 to vector<2x10xf32>
      %569 = arith.mulf %567, %568 : vector<2x10xf32>
      %c0_287 = arith.constant 0 : index
      %c0_288 = arith.constant 0 : index
      %570 = vector.load %arg6[%c0_287, %c0_288] : memref<2x10xf32, #tpu.memory_space<vmem>>, vector<2x10xf32>
      tpu.vector_store %arg6[%c0_287, %c0_288], %569 {strides = array<i32>} : memref<2x10xf32, #tpu.memory_space<vmem>>, vector<2x10xf32>,
    } else {
    }
    return
  }
  func.func @transform_0(%arg0: i32) -> (i32, i32) {
    %c0_i32 = arith.constant 0 : i32
    %c0_i32_0 = arith.constant 0 : i32
    %c0_i32_1 = arith.constant 0 : i32
    return %c0_i32, %c0_i32_0 : i32, i32
  }
  func.func @transform_1(%arg0: i32) -> (i32, i32) {
    %c0_i32 = arith.constant 0 : i32
    %c0_i32_0 = arith.constant 0 : i32
    %c0_i32_1 = arith.constant 0 : i32
    return %c0_i32, %c0_i32_0 : i32, i32
  }
  func.func @transform_2(%arg0: i32) -> (i32, i32) {
    %c0_i32 = arith.constant 0 : i32
    %c0_i32_0 = arith.constant 0 : i32
    %c0_i32_1 = arith.constant 0 : i32
    return %c0_i32, %c0_i32_0 : i32, i32
  }
  func.func @transform_3(%arg0: i32) -> (i32, i32) {
    %c0_i32 = arith.constant 0 : i32
    %c0_i32_0 = arith.constant 0 : i32
    %c0_i32_1 = arith.constant 0 : i32
    return %c0_i32, %c0_i32_0 : i32, i32
  }
  func.func @transform_4(%arg0: i32) -> (i32, i32) {
    %c0_i32 = arith.constant 0 : i32
    %c0_i32_0 = arith.constant 0 : i32
    %c0_i32_1 = arith.constant 0 : i32
    return %c0_i32, %c0_i32_0 : i32, i32
  }
  func.func @transform_5(%arg0: i32) -> (i32, i32) {
    %c0_i32 = arith.constant 0 : i32
    %c0_i32_0 = arith.constant 0 : i32
    %c0_i32_1 = arith.constant 0 : i32
    return %c0_i32, %c0_i32_0 : i32, i32
  }
  func.func @transform_6(%arg0: i32) -> (i32, i32, i32) {
    %c0_i32 = arith.constant 0 : i32
    %c0_i32_0 = arith.constant 0 : i32
    %c0_i32_1 = arith.constant 0 : i32
    return %arg0, %c0_i32, %c0_i32_0 : i32, i32, i32
  }
  func.func @transform_7(%arg0: i32) -> (i32, i32, i32) {
    %c0_i32 = arith.constant 0 : i32
    %c0_i32_0 = arith.constant 0 : i32
    %c0_i32_1 = arith.constant 0 : i32
    return %arg0, %c0_i32, %c0_i32_0 : i32, i32, i32
  }
  func.func @transform_8(%arg0: i32) -> (i32, i32, i32) {
    %c0_i32 = arith.constant 0 : i32
    %c0_i32_0 = arith.constant 0 : i32
    %c0_i32_1 = arith.constant 0 : i32
    return %arg0, %c0_i32, %c0_i32_0 : i32, i32, i32
  }
}

</mosaic_0001>

<bundles_post_ra>
// kernel: tpu_custom_call.1
= control target key start
LH: loop header
LB: loop body
LE: loop exit
PB: predicated region body
PF: predicated region fallthrough
CT: control target
= control target key end

     0   :  { %14 = vsyncpa [#allocation12], 0  ;;  %s2563_s0 = inlined_call_operand.vmem [shape: f32[2,256], index: 0, kind: input, shape index: {}]   ;;  %s2564_s1 = inlined_call_operand.vmem [shape: bf16[256,338], index: 1, kind: input, shape index: {}]   ;;  %s2565_s2 = inlined_call_operand.vmem [shape: f32[1,338], index: 2, kind: input, shape index: {}]   ;;  %s2566_s3 = inlined_call_operand.vmem [shape: bf16[324,10], index: 3, kind: input, shape index: {}]   ;;  %s2567_s4 = inlined_call_operand.vmem [shape: f32[1,10], index: 4, kind: input, shape index: {}]   ;;  %s2568_s5 = inlined_call_operand.hbm [shape: f32[2,10], index: 5, kind: output, shape index: {0}]   ;;  %s2569_s6 = inlined_call_operand.hbm [shape: f32[8,2,338], index: 6, kind: output, shape index: {1}]   ;;  %s2570_s7 = inlined_call_operand.hbm [shape: f32[8,2,10], index: 7, kind: output, shape index: {2}]   ;;  %s2571_s8 = inlined_call_operand.hbm [shape: f32[8,2,256], index: 8, kind: output, shape index: {3}]  }
   0x1   :  { %15 = vsyncpa [#allocation14], 0  ;;  %vm33_vm0 = vcmask 1041408   ;;  %vm34_vm1 = vcmask 1043458   ;;  %vm36_vm2 = vcmask 668676   ;;  %v1977_v0 = vmov 0.0  }
   0x2   :  { %vm35_vm3 = vmor %vm34_vm1, %vm33_vm0  ;;  %32 = vst [vmem:[#allocation2] sm:$0xf] %v1977_v0  ;;  %v1590_v1 = vld [vmem:[%s2564_s1 + $0xa8] sm:$0xf]  ;;  %v1815_v2 = vld [vmem:[%s2564_s1 + $0xb0] sm:$0xf0] }
   0x3   :  { %vm2043_vm4 = vmor %vm36_vm2, %vm35_vm3  ;;  %v1591_v4 = vor.u32 %v1815_v2, %v1590_v1  ;;  %v1686_v5 = vld [vmem:[%s2564_s1 + $0x168] sm:$0xf]  ;;  %v1839_v6 = vld [vmem:[%s2564_s1 + $0x170] sm:$0xf0]  ;;  %s1978_s9 = smov 127  }
   0x4   :  { %38 = vst.msk [vmem:[#allocation3] sm:$0x3f] %vm2043_vm4, %v1977_v0  ;;  %v1687_v7 = vor.u32 %v1839_v6, %v1686_v5  ;;  %v1578_v8 = vld [vmem:[%s2564_s1 + $0x90] sm:$0xf]  ;;  %v1812_v9 = vld [vmem:[%s2564_s1 + $0x98] sm:$0xf0] }
   0x5   :  { %39 = vst.msk [vmem:[#allocation4] sm:$0x3f] %vm2043_vm4, %v1977_v0  ;;  %555 = vmatpush.bf16.msra.mxu0 %v1591_v4  ;;  %v1579_v10 = vor.u32 %v1812_v9, %v1578_v8  ;;  %v1674_v11 = vld [vmem:[%s2564_s1 + $0x150] sm:$0xf]  ;;  %v1836_v12 = vld [vmem:[%s2564_s1 + $0x158] sm:$0xf0] }
   0x6   :  { %569 = vmatpush.bf16.msra.mxu1 %v1687_v7  ;;  %v1675_v13 = vor.u32 %v1836_v12, %v1674_v11  ;;  %v1566_v14 = vld [vmem:[%s2564_s1 + $0x78] sm:$0xf]  ;;  %v1809_v15 = vld [vmem:[%s2564_s1 + $0x80] sm:$0xf0]  ;;  %v1814_v18 = vld [vmem:[%s2564_s1 + $0xac] sm:$0xf] }
   0x7   :  { %v1662_v16 = vld [vmem:[%s2564_s1 + $0x138] sm:$0xf]  ;;  %v1833_v17 = vld [vmem:[%s2564_s1 + $0x140] sm:$0xf0]  ;;  %v1567_v19 = vor.u32 %v1809_v15, %v1566_v14  ;;  %v1838_v21 = vld [vmem:[%s2564_s1 + $0x16c] sm:$0xf] }
   0x8   :  { %v1592_v20 = vld [vmem:[%s2564_s1 + $0xb4] sm:$0xf0]  ;;  %v1663_v23 = vor.u32 %v1833_v17, %v1662_v16  ;;  %v1554_v24 = vld [vmem:[%s2564_s1 + $0x60] sm:$0xf]  ;;  %v1806_v25 = vld [vmem:[%s2564_s1 + $0x68] sm:$0xf0] }
   0x9   :  { %556 = vmatpush.bf16.msra.mxu0 %v1579_v10  ;;  %v1688_v22 = vld [vmem:[%s2564_s1 + $0x174] sm:$0xf0]  ;;  %v1650_v26 = vld [vmem:[%s2564_s1 + $0x120] sm:$0xf]  ;;  %v1595_v27 = vor.u32 %v1814_v18, %v1592_v20  ;;  %v1830_v30 = vld [vmem:[%s2564_s1 + $0x128] sm:$0xf0]  ;;  %v1555_v35 = vor.u32 %v1806_v25, %v1554_v24 }
   0xa   :  { %570 = vmatpush.bf16.msra.mxu1 %v1675_v13  ;;  %v1691_v28 = vor.u32 %v1838_v21, %v1688_v22  ;;  %v1811_v31 = vld [vmem:[%s2564_s1 + $0x94] sm:$0xf]  ;;  %v1580_v34 = vld [vmem:[%s2564_s1 + $0x9c] sm:$0xf0]  ;;  %v1651_v40 = vor.u32 %v1830_v30, %v1650_v26  ;;  %v1542_v41 = vld [vmem:[%s2564_s1 + $0x48] sm:$0xf] }
   0xb   :  { %v646_v29 = vld [vmem:[#allocation3] sm:$0x3f]  ;;  %583 = vmatpush.bf16.msra.mxu2 %v1595_v27  ;;  %v1583_v36 = vor.u32 %v1811_v31, %v1580_v34  ;;  %v1835_v37 = vld [vmem:[%s2564_s1 + $0x154] sm:$0xf]  ;;  %v1676_v38 = vld [vmem:[%s2564_s1 + $0x15c] sm:$0xf0] }
   0xc   :  { %v2110_v32 = vld [vmem:[#allocation4] sm:$0x3f]  ;;  %v648_v33 = vsub.f32 0.0, %v646_v29  ;;  %597 = vmatpush.bf16.msra.mxu3 %v1691_v28  ;;  %v1638_v43 = vld [vmem:[%s2564_s1 + $0x108] sm:$0xf]  ;;  %v1679_v44 = vor.u32 %v1835_v37, %v1676_v38 }
   0xd   :  { %557 = vmatpush.bf16.msra.mxu0 %v1567_v19  ;;  %v1803_v42 = vld [vmem:[%s2564_s1 + $0x50] sm:$0xf0]  ;;  %v1808_v46 = vld [vmem:[%s2564_s1 + $0x7c] sm:$0xf]  ;;  %v1568_v47 = vld [vmem:[%s2564_s1 + $0x84] sm:$0xf0] }
   0xe   :  { %v649_v39 = vadd.f32 %v648_v33, %v2110_v32  ;;  %571 = vmatpush.bf16.msra.mxu1 %v1663_v23  ;;  %v1827_v45 = vld [vmem:[%s2564_s1 + $0x110] sm:$0xf0]  ;;  %v1571_v49 = vor.u32 %v1808_v46, %v1568_v47  ;;  %v1832_v50 = vld [vmem:[%s2564_s1 + $0x13c] sm:$0xf]  ;;  %v1664_v51 = vld [vmem:[%s2564_s1 + $0x144] sm:$0xf0]  ;;  %v1543_v52 = vor.u32 %v1803_v42, %v1542_v41 }
   0xf   :  { %584 = vmatpush.bf16.msra.mxu2 %v1583_v36  ;;  %v1530_v53 = vld [vmem:[%s2564_s1 + $0x30] sm:$0xf]  ;;  %v1800_v54 = vld [vmem:[%s2564_s1 + $0x38] sm:$0xf0]  ;;  %v1667_v55 = vor.u32 %v1832_v50, %v1664_v51  ;;  %v1639_v57 = vor.u32 %v1827_v45, %v1638_v43  ;;  %v1805_v59 = vld [vmem:[%s2564_s1 + $0x64] sm:$0xf] }
  0x10   :  { %v650_v48 = vmul.f32 0.1, %v649_v39  ;;  %598 = vmatpush.bf16.msra.mxu3 %v1679_v44  ;;  %v1626_v58 = vld [vmem:[%s2564_s1 + $0xf0] sm:$0xf]  ;;  %v1824_v61 = vld [vmem:[%s2564_s1 + $0xf8] sm:$0xf0]  ;;  %v1531_v4 = vor.u32 %v1800_v54, %v1530_v53 }
  0x11   :  { %558 = vmatpush.bf16.msra.mxu0 %v1555_v35  ;;  %v1556_v60 = vld [vmem:[%s2564_s1 + $0x6c] sm:$0xf0]  ;;  %v1829_v62 = vld [vmem:[%s2564_s1 + $0x124] sm:$0xf]  ;;  %v1802_v6 = vld [vmem:[%s2564_s1 + $0x4c] sm:$0xf]  ;;  %v1627_v8 = vor.u32 %v1824_v61, %v1626_v58 }
  0x12   :  { %v2152_v56 = vadd.f32 %v650_v48, %v646_v29  ;;  %572 = vmatpush.bf16.msra.mxu1 %v1651_v40  ;;  %v1652_v63 = vld [vmem:[%s2564_s1 + $0x12c] sm:$0xf0]  ;;  %v1559_v2 = vor.u32 %v1805_v59, %v1556_v60  ;;  %v1544_v7 = vld [vmem:[%s2564_s1 + $0x54] sm:$0xf0]  ;;  %v1797_v10 = vld [vmem:[%s2564_s1 + $0x20] sm:$0xf0] }
  0x13   :  { %585 = vmatpush.bf16.msra.mxu2 %v1571_v49  ;;  %v1655_v5 = vor.u32 %v1829_v62, %v1652_v63  ;;  %v1518_v9 = vld [vmem:[%s2564_s1 + $0x18] sm:$0xf]  ;;  %v1821_v13 = vld [vmem:[%s2564_s1 + $0xe0] sm:$0xf0]  ;;  %v1506_v14 = vld [vmem:[%s2564_s1] sm:$0xf]  ;;  %v1547_v16 = vor.u32 %v1802_v6, %v1544_v7 }
  0x14   :  { %v1696_v1 = vadd.f32 -1.0, %v2152_v56  ;;  %599 = vmatpush.bf16.msra.mxu3 %v1667_v55  ;;  %v1614_v12 = vld [vmem:[%s2564_s1 + $0xd8] sm:$0xf]  ;;  %v1794_v15 = vld [vmem:[%s2564_s1 + $0x8] sm:$0xf0]  ;;  %v1519_v18 = vor.u32 %v1797_v10, %v1518_v9 }
  0x15   :  { %559 = vmatpush.bf16.msra.mxu0 %v1543_v52  ;;  %v44_v17 = vld [vmem:[%s2563_s0] sm:$0xf]  ;;  %v46_v20 = vld [vmem:[#allocation2] sm:$0xf]  ;;  %v1615_v21 = vor.u32 %v1821_v13, %v1614_v12 }
  0x16   :  { %vm655_vm5 = vcmp.gt.f32.partialorder %v1696_v1, 0.0  ;;  %573 = vmatpush.bf16.msra.mxu1 %v1639_v57  ;;  %v2208_v19 = vmul.f32 6.0, %v44_v17  ;;  %v1602_v22 = vld [vmem:[%s2564_s1 + $0xc0] sm:$0xf]  ;;  %v47_v23 = vsub.f32 0.0, %v46_v20 }
  0x17   :  { %v2186_v11 = vsel %vm655_vm5, 1.0, %v1977_v0  ;;  %586 = vmatpush.bf16.msra.mxu2 %v1559_v2 }
  0x18   :  { %680 = vrot.lane.b32.xlu0 %v2186_v11, %s1978_s9  ;;  %678 = vst.msk [vmem:[#allocation13] sm:$0x3f] %vm2043_vm4, %v2186_v11  ;;  %600 = vmatpush.bf16.msra.mxu3 %v1655_v5 }
  0x19   :  { %560 = vmatpush.bf16.msra.mxu0 %v1531_v4 }
  0x1a   :  { %574 = vmatpush.bf16.msra.mxu1 %v1627_v8 }
  0x1b   :  { %16 = vsyncpa [#allocation17], 0  ;;  %v1818_v24 = vld [vmem:[%s2564_s1 + $0xc8] sm:$0xf0]  ;;  %v1598_v25 = vld [vmem:[%s2564_s1 + $0xb0] sm:$0xf]  ;;  %587 = vmatpush.bf16.msra.mxu2 %v1547_v16  ;;  %v48_v29 = vadd.f32 %v47_v23, %v2208_v19  ;;  %v1507_v30 = vor.u32 %v1794_v15, %v1506_v14 }
  0x1c   :  { %v1816_v26 = vld [vmem:[%s2564_s1 + $0xb8] sm:$0xf0]  ;;  %v1694_v27 = vld [vmem:[%s2564_s1 + $0x170] sm:$0xf]  ;;  %v1603_v31 = vor.u32 %v1818_v24, %v1602_v22  ;;  %vm683_vm12 = vcmask 1039360   ;;  %s1979_s21 = smov 115  }
  0x1d   :  { %v1840_v28 = vld [vmem:[%s2564_s1 + $0x178] sm:$0xf0]  ;;  %561 = vmatpush.bf16.msra.mxu0 %v1519_v18  ;;  %v1599_v33 = vor.u32 %v1816_v26, %v1598_v25  ;;  %v49_v34 = vmul.f32 0.1, %v48_v29  ;;  %v1826_v26 = vld [vmem:[%s2564_s1 + $0x10c] sm:$0xf] }
  0x1e   :  { %575 = vmatpush.bf16.msra.mxu1 %v1615_v21  ;;  %v1695_v35 = vor.u32 %v1840_v28, %v1694_v27  ;;  %v1640_v27 = vld [vmem:[%s2564_s1 + $0x114] sm:$0xf0]  ;;  %vm691_vm15 = vcmask 941056   ;;  %vm705_vm1 = vcmask 549888   ;;  %vm641_vm2 = vcmask 670720   ;;  %v1841_v3 = vld [vmem:[%s2566_s3] sm:$0xff] }
  0x1f   :  { %v50_v36 = vadd.f32 %v49_v34, %v46_v20  ;;  %v1643_v28 = vor.u32 %v1826_v26, %v1640_v27  ;;  %vm670_vm3 = vcmask 1043456   ;;  %s1428_s20 = sshll.u32 %s2569_s6, 4  ;;  %s1980_s0 = smov [#allocation13]   ;;  %s1429_s20 = int_to_ptr.hbm [resolvable:$true] %s1428_s20 }
  0x20   :  { %s1426_s22 = sshll.u32 %s1980_s0, 4  ;;  %s1981_s23 = smov 96   ;;  %s1427_s22 = int_to_ptr.vmem [resolvable:$true] %s1426_s22 }
  0x21   :  { %562 = vmatpush.bf16.msra.mxu0 %v1507_v30  ;;  %v1480_v37 = vadd.f32 -1.0, %v50_v36  ;;  %v1482_v38 = vadd.f32 1000.0, %v50_v36  ;;  %v1799_v30 = vld [vmem:[%s2564_s1 + $0x34] sm:$0xf]  ;;  %601 = vmatpush.bf16.msra.mxu3 %v1643_v28  ;;  %s1982_s24 = smov 6   ;;  %s1983_s6 = smov [#allocation16]  }
  0x22   :  { %576 = vmatpush.bf16.msra.mxu1 %v1603_v31  ;;  %v1532_v31 = vld [vmem:[%s2564_s1 + $0x3c] sm:$0xf0]  ;;  %s1984_s26 = smov 64   ;;  %s1985_s27 = smov 4  }
  0x23   :  { %vm52_vm6 = vcmp.gt.f32.partialorder %v1480_v37, 0.0  ;;  %v1535_v34 = vor.u32 %v1799_v30, %v1532_v31  ;;  %v1837_v37 = vld [vmem:[%s2564_s1 + $0x160] sm:$0xf0]  ;;  %s1987_s11 = smov 32   ;;  %s1988_s12 = smov 2  }
  0x24   :  { %v1481_v39 = vsel %vm52_vm6, 1.0, %v1977_v0  ;;  %s1989_s13 = smov [#allocation11]   ;;  %s1418_s16 = sshll.u32 %s2568_s5, 4  ;;  %s1419_s16 = int_to_ptr.hbm [resolvable:$true] %s1418_s16 }
  0x25   :  { %611 = vmatpush.bf16.msrb.mxu0 %v1599_v33  ;;  %v56_v40 = vmul.f32 %v1482_v38, %v1481_v39  ;;  %60 = vst [vmem:[#allocation1] ss:$4 sm:$0xff] %v1481_v39  ;;  %v1586_v33 = vld [vmem:[%s2564_s1 + $0x98] sm:$0xf]  ;;  %588 = vmatpush.bf16.msra.mxu2 %v1535_v34  ;;  %v1550_v34 = vld [vmem:[%s2564_s1 + $0x50] sm:$0xf] }
  0x26   :  { %625 = vmatpush.bf16.msrb.mxu1 %v1695_v35  ;;  %58 = vst [vmem:[#allocation16] sm:$0xf] %v1481_v39  ;;  %v1813_v35 = vld [vmem:[%s2564_s1 + $0xa0] sm:$0xf0] }
  0x27   :  { %v57_v41 = vsub.f32 %v50_v36, %v56_v40  ;;  %v1682_v36 = vld [vmem:[%s2564_s1 + $0x158] sm:$0xf]  ;;  %v1587_v38 = vor.u32 %v1813_v35, %v1586_v33  ;;  %v1823_v40 = vld [vmem:[%s2564_s1 + $0xf4] sm:$0xf]  ;;  %v1804_v35 = vld [vmem:[%s2564_s1 + $0x58] sm:$0xf0] }
  0x28   :  { %v1683_v39 = vor.u32 %v1837_v37, %v1682_v36  ;;  %v1551_v37 = vor.u32 %v1804_v35, %v1550_v34 }
  0x29   :  { %v67_v42 = vsub.f32 0.0, %v57_v41  ;;  %612 = vmatpush.bf16.msrb.mxu0 %v1587_v38  ;;  %v1646_v38 = vld [vmem:[%s2564_s1 + $0x110] sm:$0xf] }
  0x2a   :  { %626 = vmatpush.bf16.msrb.mxu1 %v1683_v39  ;;  %v1828_v39 = vld [vmem:[%s2564_s1 + $0x118] sm:$0xf0] }
  0x2b   :  { %v68_v43 = vadd.f32 %v67_v42, %v2208_v19 }
  0x2c   :  { %v61_v58 = vld.sshfl [vmem:[#allocation1] sm:$0xff pattern:$0x73625140]  ;;  %v62_v59 = vld.sshfl [vmem:[#allocation1 + $0x8] sm:$0xff pattern:$0x73625140] }
  0x2d   :  { %v69_v44 = vmul.f32 0.1, %v68_v43  ;;  %65 = vst [vmem:[#allocation7 + $0x10] sm:$0x3] %v61_v58  ;;  %v1508_v58 = vld [vmem:[%s2564_s1 + $0xc] sm:$0xf0] }
  0x2e   :  { %66 = vst [vmem:[#allocation7] sm:$0x3] %v62_v59  ;;  %v1562_v59 = vld [vmem:[%s2564_s1 + $0x68] sm:$0xf] }
  0x2f   :  { %v70_v45 = vadd.f32 %v69_v44, %v57_v41  ;;  %v1628_v41 = vld [vmem:[%s2564_s1 + $0xfc] sm:$0xf0]  ;;  %v1796_v44 = vld [vmem:[%s2564_s1 + $0x1c] sm:$0xf] }
  0x30   :  { %v1631_v42 = vor.u32 %v1823_v40, %v1628_v41  ;;  %v1647_v40 = vor.u32 %v1828_v39, %v1646_v38  ;;  %v1538_v41 = vld [vmem:[%s2564_s1 + $0x38] sm:$0xf] }
  0x31   :  { %v1483_v46 = vadd.f32 -1.0, %v70_v45  ;;  %v1485_v47 = vadd.f32 1000.0, %v70_v45 }
  0x32   :  { %602 = vmatpush.bf16.msra.mxu3 %v1631_v42  ;;  %v1801_v42 = vld [vmem:[%s2564_s1 + $0x40] sm:$0xf0] }
  0x33   :  { %vm72_vm7 = vcmp.gt.f32.partialorder %v1483_v46, 0.0  ;;  %v1574_v46 = vld [vmem:[%s2564_s1 + $0x80] sm:$0xf] }
  0x34   :  { %v1484_v48 = vsel %vm72_vm7, 1.0, %v1977_v0  ;;  %vm759_vm7 = vcmask 551938  }
  0x35   :  { %v76_v49 = vmul.f32 %v1485_v47, %v1484_v48  ;;  %79 = vst [vmem:[#allocation16 + $0x4] sm:$0xf] %v1484_v48 }
  0x36   :  { %82 = vst [vmem:[#allocation1 + $0x1] ss:$4 sm:$0xff] %v1484_v48  ;;  %v1810_v48 = vld [vmem:[%s2564_s1 + $0x88] sm:$0xf0] }
  0x37   :  { %v77_v50 = vsub.f32 %v70_v45, %v76_v49  ;;  %v1520_v45 = vld [vmem:[%s2564_s1 + $0x24] sm:$0xf0]  ;;  %v1670_v49 = vld [vmem:[%s2564_s1 + $0x140] sm:$0xf] }
  0x38   :  { %v1523_v47 = vor.u32 %v1796_v44, %v1520_v45  ;;  %v1539_v45 = vor.u32 %v1801_v42, %v1538_v41 }
  0x39   :  { %v89_v51 = vsub.f32 0.0, %v77_v50 }
  0x3a   :  { %589 = vmatpush.bf16.msra.mxu2 %v1523_v47 }
  0x3b   :  { %v90_v52 = vadd.f32 %v89_v51, %v2208_v19  ;;  %v1575_v51 = vor.u32 %v1810_v48, %v1574_v46  ;;  %v1825_v46 = vld [vmem:[%s2564_s1 + $0x100] sm:$0xf0]  ;;  %v1526_v48 = vld [vmem:[%s2564_s1 + $0x20] sm:$0xf] }
  0x3d   :  { %v91_v53 = vmul.f32 0.1, %v90_v52  ;;  %v83_v2 = vld.sshfl [vmem:[#allocation1] sm:$0xff pattern:$0x73625140]  ;;  %613 = vmatpush.bf16.msrb.mxu0 %v1575_v51 }
  0x3e   :  { %v84_v4 = vld.sshfl [vmem:[#allocation1 + $0x8] sm:$0xff pattern:$0x73625140]  ;;  %87 = vst [vmem:[#allocation7 + $0x10] sm:$0xc] %v83_v2 }
  0x3f   :  { %v92_v54 = vadd.f32 %v91_v53, %v77_v50  ;;  %88 = vst [vmem:[#allocation7] sm:$0xc] %v84_v4  ;;  %v1834_v50 = vld [vmem:[%s2564_s1 + $0x148] sm:$0xf0]  ;;  %v1820_v53 = vld [vmem:[%s2564_s1 + $0xdc] sm:$0xf] }
  0x40   :  { %v1671_v52 = vor.u32 %v1834_v50, %v1670_v49  ;;  %v1831_v2 = vld [vmem:[%s2564_s1 + $0x130] sm:$0xf0]  ;;  %v1817_v4 = vld [vmem:[%s2564_s1 + $0xc4] sm:$0xf]  ;;  %v1798_v49 = vld [vmem:[%s2564_s1 + $0x28] sm:$0xf0] }
  0x41   :  { %v1486_v55 = vadd.f32 -1.0, %v92_v54  ;;  %v1488_v57 = vadd.f32 1000.0, %v92_v54  ;;  %v1622_v51 = vld [vmem:[%s2564_s1 + $0xe0] sm:$0xf] }
  0x42   :  { %627 = vmatpush.bf16.msrb.mxu1 %v1671_v52  ;;  %v1822_v52 = vld [vmem:[%s2564_s1 + $0xe8] sm:$0xf0] }
  0x43   :  { %vm94_vm8 = vcmp.gt.f32.partialorder %v1486_v55, 0.0  ;;  %v1793_v55 = vld [vmem:[%s2564_s1 + $0x4] sm:$0xf] }
  0x44   :  { %v1487_v60 = vsel %vm94_vm8, 1.0, %v1977_v0 }
  0x45   :  { %v98_v61 = vmul.f32 %v1488_v57, %v1487_v60  ;;  %101 = vst [vmem:[#allocation16 + $0x8] sm:$0xf] %v1487_v60 }
  0x46   :  { %104 = vst [vmem:[#allocation1 + $0x2] ss:$4 sm:$0xff] %v1487_v60  ;;  %v1807_v60 = vld [vmem:[%s2564_s1 + $0x70] sm:$0xf0] }
  0x47   :  { %v99_v62 = vsub.f32 %v92_v54, %v98_v61  ;;  %v1616_v54 = vld [vmem:[%s2564_s1 + $0xe4] sm:$0xf0] }
  0x48   :  { %v1619_v57 = vor.u32 %v1820_v53, %v1616_v54 }
  0x49   :  { %v111_v63 = vsub.f32 0.0, %v99_v62 }
  0x4a   :  { %603 = vmatpush.bf16.msra.mxu3 %v1619_v57  ;;  %v1527_v57 = vor.u32 %v1798_v49, %v1526_v48 }
  0x4b   :  { %v112_v1 = vadd.f32 %v111_v63, %v2208_v19  ;;  %v1563_v63 = vor.u32 %v1807_v60, %v1562_v59  ;;  %v1795_v59 = vld [vmem:[%s2564_s1 + $0x10] sm:$0xf0] }
  0x4d   :  { %v113_v5 = vmul.f32 0.1, %v112_v1  ;;  %v105_v10 = vld.sshfl [vmem:[#allocation1] sm:$0xff pattern:$0x73625140]  ;;  %614 = vmatpush.bf16.msrb.mxu0 %v1563_v63 }
  0x4e   :  { %v106_v12 = vld.sshfl [vmem:[#allocation1 + $0x8] sm:$0xff pattern:$0x73625140]  ;;  %109 = vst [vmem:[#allocation7 + $0x10] sm:$0x30] %v105_v10 }
  0x4f   :  { %v114_v6 = vadd.f32 %v113_v5, %v99_v62  ;;  %110 = vst [vmem:[#allocation7] sm:$0x30] %v106_v12  ;;  %v1511_v62 = vor.u32 %v1793_v55, %v1508_v58  ;;  %v1658_v1 = vld [vmem:[%s2564_s1 + $0x128] sm:$0xf]  ;;  %v1623_v58 = vor.u32 %v1822_v52, %v1622_v51  ;;  %v658_v52 = vsub.f32 1.0, %v2186_v11 }
  0x50   :  { %v1659_v5 = vor.u32 %v1831_v2, %v1658_v1 }
  0x51   :  { %v1489_v7 = vadd.f32 -1.0, %v114_v6  ;;  %v1491_v8 = vadd.f32 1000.0, %v114_v6  ;;  %590 = vmatpush.bf16.msra.mxu2 %v1511_v62  ;;  %615 = vmatpush.bf16.msrb.mxu0 %v1551_v37  ;;  %v1819_v62 = vld [vmem:[%s2564_s1 + $0xd0] sm:$0xf0] }
  0x52   :  { %628 = vmatpush.bf16.msrb.mxu1 %v1659_v5 }
  0x53   :  { %vm116_vm9 = vcmp.gt.f32.partialorder %v1489_v7, 0.0 }
  0x54   :  { %v1490_v9 = vsel %vm116_vm9, 1.0, %v1977_v0  ;;  %vm813_vm9 = vcmask 553988  }
  0x55   :  { %v120_v13 = vmul.f32 %v1491_v8, %v1490_v9  ;;  %126 = vst [vmem:[#allocation1 + $0x3] ss:$4 sm:$0xff] %v1490_v9  ;;  %616 = vmatpush.bf16.msrb.mxu0 %v1539_v45 }
  0x56   :  { %123 = vst [vmem:[#allocation16 + $0xc] sm:$0xf] %v1490_v9  ;;  %629 = vmatpush.bf16.msrb.mxu1 %v1647_v40 }
  0x57   :  { %v121_v14 = vsub.f32 %v114_v6, %v120_v13  ;;  %v1604_v6 = vld [vmem:[%s2564_s1 + $0xcc] sm:$0xf0] }
  0x58   :  { %v1607_v8 = vor.u32 %v1817_v4, %v1604_v6 }
  0x59   :  { %v133_v15 = vsub.f32 0.0, %v121_v14  ;;  %617 = vmatpush.bf16.msrb.mxu0 %v1527_v57 }
  0x5a   :  { %604 = vmatpush.bf16.msra.mxu3 %v1607_v8 }
  0x5b   :  { %v134_v16 = vadd.f32 %v133_v15, %v2208_v19 }
  0x5c   :  { %v127_v18 = vld.sshfl [vmem:[#allocation1] sm:$0xff pattern:$0x73625140]  ;;  %v128_v20 = vld.sshfl [vmem:[#allocation1 + $0x8] sm:$0xff pattern:$0x73625140] }
  0x5d   :  { %v135_v17 = vmul.f32 0.1, %v134_v16  ;;  %131 = vst [vmem:[#allocation7 + $0x10] sm:$0xc0] %v127_v18 }
  0x5e   :  { %132 = vst [vmem:[#allocation7] sm:$0xc0] %v128_v20 }
  0x5f   :  { %v136_v21 = vadd.f32 %v135_v17, %v121_v14 }
  0x61   :  { %v1492_v22 = vadd.f32 -1.0, %v136_v21  ;;  %v1494_v23 = vadd.f32 1000.0, %v136_v21 }
  0x63   :  { %vm138_vm10 = vcmp.gt.f32.partialorder %v1492_v22, 0.0 }
  0x64   :  { %v1493_v24 = vsel %vm138_vm10, 1.0, %v1977_v0 }
  0x65   :  { %v142_v25 = vmul.f32 %v1494_v23, %v1493_v24  ;;  %147 = vst [vmem:[#allocation1] ss:$4 sm:$0xff] %v1493_v24 }
  0x66   :  { %145 = vst [vmem:[#allocation16 + $0x10] sm:$0xf] %v1493_v24 }
  0x67   :  { %v143_v29 = vsub.f32 %v136_v21, %v142_v25 }
  0x69   :  { %v154_v43 = vsub.f32 0.0, %v143_v29 }
  0x6b   :  { %v155_v61 = vadd.f32 %v154_v43, %v2208_v19  ;;  %v1634_v43 = vld [vmem:[%s2564_s1 + $0xf8] sm:$0xf] }
  0x6c   :  { %v148_v7 = vld.sshfl [vmem:[#allocation1] sm:$0xff pattern:$0x73625140]  ;;  %v149_v9 = vld.sshfl [vmem:[#allocation1 + $0x8] sm:$0xff pattern:$0x73625140]  ;;  %v1635_v47 = vor.u32 %v1825_v46, %v1634_v43 }
  0x6d   :  { %152 = vst [vmem:[#allocation7 + $0x18] sm:$0x3] %v148_v7  ;;  %v156_v10 = vmul.f32 0.1, %v155_v61  ;;  %v1610_v61 = vld [vmem:[%s2564_s1 + $0xc8] sm:$0xf] }
  0x6e   :  { %153 = vst [vmem:[#allocation7 + $0x8] sm:$0x3] %v149_v9  ;;  %630 = vmatpush.bf16.msrb.mxu1 %v1635_v47  ;;  %v1611_v4 = vor.u32 %v1819_v62, %v1610_v61 }
  0x6f   :  { %v157_v12 = vadd.f32 %v156_v10, %v143_v29  ;;  %v221_v10 = vld [vmem:[#allocation7 + $0x10] sm:$0xff] }
  0x71   :  { %v1495_v13 = vadd.f32 -1.0, %v157_v12  ;;  %v1497_v14 = vadd.f32 1000.0, %v157_v12 }
  0x72   :  { %631 = vmatpush.bf16.msrb.mxu1 %v1623_v58 }
  0x73   :  { %vm159_vm11 = vcmp.gt.f32.partialorder %v1495_v13, 0.0 }
  0x74   :  { %v1496_v15 = vsel %vm159_vm11, 1.0, %v1977_v0 }
  0x75   :  { %v163_v16 = vmul.f32 %v1497_v14, %v1496_v15  ;;  %169 = vst [vmem:[#allocation1 + $0x1] ss:$4 sm:$0xff] %v1496_v15 }
  0x76   :  { %166 = vst [vmem:[#allocation16 + $0x14] sm:$0xf] %v1496_v15  ;;  %632 = vmatpush.bf16.msrb.mxu1 %v1611_v4 }
  0x77   :  { %v164_v17 = vsub.f32 %v157_v12, %v163_v16  ;;  %v222_v12 = vld [vmem:[#allocation7] sm:$0xff] }
  0x79   :  { %v176_v18 = vsub.f32 0.0, %v164_v17 }
  0x7b   :  { %v177_v20 = vadd.f32 %v176_v18, %v2208_v19 }
  0x7c   :  { %v170_v21 = vld.sshfl [vmem:[#allocation1] sm:$0xff pattern:$0x73625140]  ;;  %v171_v22 = vld.sshfl [vmem:[#allocation1 + $0x8] sm:$0xff pattern:$0x73625140] }
  0x7d   :  { %174 = vst [vmem:[#allocation7 + $0x18] sm:$0xc] %v170_v21  ;;  %v178_v23 = vmul.f32 0.1, %v177_v20 }
  0x7e   :  { %175 = vst [vmem:[#allocation7 + $0x8] sm:$0xc] %v171_v22 }
  0x7f   :  { %v179_v24 = vadd.f32 %v178_v23, %v164_v17 }
  0x81   :  { %v1498_v25 = vadd.f32 -1.0, %v179_v24  ;;  %v1500_v26 = vadd.f32 1000.0, %v179_v24 }
  0x83   :  { %vm181_vm13 = vcmp.gt.f32.partialorder %v1498_v25, 0.0  ;;  %v291_v25 = vld [vmem:[%s2565_s2] sm:$0x7]  ;;  %s1454_s2 = sshll.u32 %s2571_s8, 4  ;;  %s1455_s2 = int_to_ptr.hbm [resolvable:$true] %s1454_s2 }
  0x84   :  { %v1499_v29 = vsel %vm181_vm13, 1.0, %v1977_v0  ;;  %v295_v42 = vperm.slane %v291_v25, 2  ;;  %vm867_vm13 = vcmask 556038  }
  0x85   :  { %v185_v31 = vmul.f32 %v1500_v26, %v1499_v29  ;;  %191 = vst [vmem:[#allocation1 + $0x2] ss:$4 sm:$0xff] %v1499_v29  ;;  %v293_v26 = vperm.slane %v291_v25, 0 }
  0x86   :  { %188 = vst [vmem:[#allocation16 + $0x18] sm:$0xf] %v1499_v29 }
  0x87   :  { %v186_v36 = vsub.f32 %v179_v24, %v185_v31  ;;  %v294_v31 = vperm.slane %v291_v25, 1 }
  0x89   :  { %v198_v44 = vsub.f32 0.0, %v186_v36 }
  0x8a   :  { %v681_v27 = vpop.permute.xlu0 %680 }
  0x8b   :  { %v682_v28 = vrot.slane %v681_v27, 2  ;;  %v199_v50 = vadd.f32 %v198_v44, %v2208_v19  ;;  %v1514_v19 = vld [vmem:[%s2564_s1 + $0x8] sm:$0xf] }
  0x8c   :  { %v192_v53 = vld.sshfl [vmem:[#allocation1] sm:$0xff pattern:$0x73625140]  ;;  %v193_v54 = vld.sshfl [vmem:[#allocation1 + $0x8] sm:$0xff pattern:$0x73625140]  ;;  %v1515_v2 = vor.u32 %v1795_v59, %v1514_v19  ;;  %v659_v59 = vmul.f32 %v658_v52, %v2152_v56 }
  0x8d   :  { %v684_v30 = vsel %vm683_vm12, %v681_v27, %v682_v28  ;;  %196 = vst [vmem:[#allocation7 + $0x18] sm:$0x30] %v192_v53  ;;  %v200_v55 = vmul.f32 0.1, %v199_v50 }
  0x8e   :  { %v2322_v33 = vmax.f32 %v2186_v11, %v684_v30  ;;  %197 = vst [vmem:[#allocation7 + $0x8] sm:$0x30] %v193_v54  ;;  %618 = vmatpush.bf16.msrb.mxu0 %v1515_v2  ;;  %v707_v4 = vsub.f32 0.0, %v659_v59 }
  0x8f   :  { %v201_v60 = vadd.f32 %v200_v55, %v186_v36  ;;  %v652_v55 = vmul.f32 0.2, %v2110_v32 }
  0x90   :  { %688 = vrot.lane.b32.xlu0 %v2322_v33, %s1979_s21 }
  0x91   :  { %v1501_v63 = vadd.f32 -1.0, %v201_v60  ;;  %v1503_v1 = vadd.f32 1000.0, %v201_v60  ;;  %v653_v62 = vsub.f32 %v2110_v32, %v652_v55 }
  0x93   :  { %vm203_vm14 = vcmp.gt.f32.partialorder %v1501_v63, 0.0 }
  0x94   :  { %v1502_v5 = vsel %vm203_vm14, 1.0, %v1977_v0 }
  0x95   :  { %v207_v6 = vmul.f32 %v1503_v1, %v1502_v5  ;;  %213 = vst [vmem:[#allocation1 + $0x3] ss:$4 sm:$0xff] %v1502_v5 }
  0x96   :  { %210 = vst [vmem:[#allocation16 + $0x1c] sm:$0xf] %v1502_v5 }
  0x97   :  { %v208_v7 = vsub.f32 %v201_v60, %v207_v6 }
  0x99   :  { %220 = vst [vmem:[#allocation2] sm:$0xf] %v208_v7 }
  0x9c   :  { %v214_v8 = vld.sshfl [vmem:[#allocation1] sm:$0xff pattern:$0x73625140]  ;;  %v215_v9 = vld.sshfl [vmem:[#allocation1 + $0x8] sm:$0xff pattern:$0x73625140] }
  0x9d   :  { %218 = vst [vmem:[#allocation7 + $0x18] sm:$0xc0] %v214_v8 }
  0x9e   :  { %219 = vst [vmem:[#allocation7 + $0x8] sm:$0xc0] %v215_v9 }
  0xa4   :  { %v223_v13 = vld [vmem:[#allocation7 + $0x18] sm:$0xff] }
  0xa5   :  { %v225_v14 = vpack.c.bf16 %v223_v13, %v221_v10  ;;  %v224_v15 = vld [vmem:[#allocation7 + $0x8] sm:$0xff] }
  0xa6   :  { %v226_v16 = vpack.c.bf16 %v224_v15, %v222_v12 }
  0xa7   :  { %563 = vmatmul.bf16.vlgmr.msra.gmra.mxu0 %v225_v14  ;;  %591 = vmatmul.bf16.vlgmr.msra.gmra.mxu2 %v225_v14 }
  0xa8   :  { %577 = vmatmul.bf16.vlgmr.msra.gmra.mxu1 %v226_v16  ;;  %605 = vmatmul.bf16.vlgmr.msra.gmra.mxu3 %v226_v16 }
  0xb7   :  { %619 = vmatmul.bf16.vlgmr.msrb.gmra.mxu0 %v225_v14 }
  0xb8   :  { %633 = vmatmul.bf16.vlgmr.msrb.gmra.mxu1 %v226_v16 }
 0x102   :  { %v689_v17 = vpop.permute.xlu0 %688 }
 0x103   :  { %v690_v18 = vrot.slane %v689_v17, 2 }
 0x105   :  { %v692_v20 = vsel %vm691_vm15, %v689_v17, %v690_v18 }
 0x106   :  { %v694_v21 = vmax.f32 %v2322_v33, %v692_v20 }
 0x108   :  { %696 = vst [vmem:[#allocation1] ss:$4 sm:$0xff] %v694_v21 }
 0x10f   :  { %v697_v22 = vld.sshfl [vmem:[#allocation1] sm:$0xff pattern:$0x73625140]  ;;  %v698_v23 = vld.sshfl [vmem:[#allocation1 + $0x8] sm:$0xff pattern:$0x73625140] }
 0x110   :  { %703 = vst [vmem:[#allocation9] sm:$0x3] %v697_v22  ;;  %v699_v24 = vld.sshfl [vmem:[#allocation1 + $0x10] sm:$0xff pattern:$0x73625140] }
 0x111   :  { %704 = vst [vmem:[#allocation9 + $0x8] sm:$0x3] %v698_v23 }
 0x112   :  { %706 = vst.msk [vmem:[#allocation9 + $0x10] sm:$0x3] %vm705_vm1, %v699_v24 }
 0x124   :  { %v564_v27 = vpop.f32.mrf.mxu0 }
 0x125   :  { %v565_v28 = vadd.f32 %v564_v27, %v293_v26  ;;  %v578_v29 = vpop.f32.mrf.mxu1 }
 0x127   :  { %v579_v30 = vadd.f32 %v578_v29, %v565_v28 }
 0x129   :  { %639 = vst [vmem:[#allocation8] sm:$0xff] %v579_v30 }
 0x12a   :  { %v592_v33 = vpop.f32.mrf.mxu2 }
 0x12b   :  { %v593_v34 = vadd.f32 %v592_v33, %v294_v31  ;;  %v606_v35 = vpop.f32.mrf.mxu3 }
 0x12c   :  { %v566_v36 = vpop.f32.mrf.mxu0 }
 0x12d   :  { %v567_v37 = vadd.f32 %v566_v36, %v293_v26  ;;  %v580_v38 = vpop.f32.mrf.mxu1  ;;  %v607_v39 = vadd.f32 %v606_v35, %v593_v34 }
 0x12f   :  { %v581_v40 = vadd.f32 %v580_v38, %v567_v37  ;;  %640 = vst [vmem:[#allocation8 + $0x8] sm:$0xff] %v607_v39 }
 0x130   :  { %v719_v41 = vld [vmem:[#allocation8] sm:$0xc]  ;;  %v660_v1 = vld [vmem:[#allocation8] sm:$0x3]  ;;  %v773_v37 = vld [vmem:[#allocation8] sm:$0x30] }
 0x131   :  { %643 = vst [vmem:[#allocation8 + $0x18] sm:$0xff] %v581_v40 }
 0x132   :  { %v594_v43 = vpop.f32.mrf.mxu2  ;;  %725 = vst.sshfl [vmem:[#allocation1] sm:$0xff pattern:$0x73625140] %v719_v41 }
 0x133   :  { %v595_v44 = vadd.f32 %v594_v43, %v294_v31  ;;  %v608_v45 = vpop.f32.mrf.mxu3 }
 0x134   :  { %v620_v46 = vpop.f32.mrf.mxu0 }
 0x135   :  { %v609_v47 = vadd.f32 %v608_v45, %v595_v44  ;;  %v621_v48 = vadd.f32 %v620_v46, %v295_v42  ;;  %v634_v49 = vpop.f32.mrf.mxu1 }
 0x136   :  { %v720_v50 = vld [vmem:[#allocation8 + $0x8] sm:$0xc]  ;;  %v661_v54 = vld [vmem:[#allocation8 + $0x8] sm:$0x3]  ;;  %v774_v41 = vld [vmem:[#allocation8 + $0x8] sm:$0x30] }
 0x137   :  { %644 = vst [vmem:[#allocation8 + $0x20] sm:$0xff] %v609_v47  ;;  %v635_v51 = vadd.f32 %v634_v49, %v621_v48  ;;  %v666_v60 = vrot.slane %v661_v54, 6 }
 0x138   :  { %726 = vst.sshfl [vmem:[#allocation1 + $0x8] sm:$0xff pattern:$0x73625140] %v720_v50 }
 0x139   :  { %642 = vst.msk [vmem:[#allocation8 + $0x10] sm:$0xff] %vm641_vm2, %v635_v51  ;;  %v669_v2 = vsel %vm33_vm0, %v660_v1, %v666_v60 }
 0x13c   :  { %v622_v53 = vpop.f32.mrf.mxu0 }
 0x13d   :  { %v623_v57 = vadd.f32 %v622_v53, %v295_v42  ;;  %v636_v58 = vpop.f32.mrf.mxu1 }
 0x13f   :  { %v637_v19 = vadd.f32 %v636_v58, %v623_v57  ;;  %v827_v57 = vld [vmem:[#allocation8] sm:$0xc0]  ;;  %v828_v58 = vld [vmem:[#allocation8 + $0x8] sm:$0xc0] }
 0x140   :  { %v721_v61 = vld [vmem:[#allocation8 + $0x10] sm:$0xc]  ;;  %v662_v63 = vld [vmem:[#allocation8 + $0x10] sm:$0x3]  ;;  %v775_v42 = vld [vmem:[#allocation8 + $0x10] sm:$0x30] }
 0x141   :  { %727 = vst.sshfl [vmem:[#allocation1 + $0x10] sm:$0xff pattern:$0x73625140] %v721_v61  ;;  %v667_v11 = vrot.slane %v662_v63, 4 }
 0x142   :  { %645 = vst.msk [vmem:[#allocation8 + $0x28] sm:$0xff] %vm641_vm2, %v637_v19 }
 0x143   :  { %v671_v5 = vsel %vm670_vm3, %v669_v2, %v667_v11 }
 0x144   :  { %v673_v6 = vadd.f32 %v671_v5, %v653_v62  ;;  %v829_v62 = vld [vmem:[#allocation8 + $0x10] sm:$0xc0]  ;;  %v882_v5 = vld [vmem:[#allocation8 + $0x20] sm:$0x3] }
 0x146   :  { %v708_v7 = vadd.f32 %v707_v4, %v673_v6  ;;  %v711_v10 = vmul.f32 0.2, %v673_v6 }
 0x148   :  { %v709_v8 = vmul.f32 0.1, %v708_v7  ;;  %v712_v13 = vsub.f32 %v673_v6, %v711_v10  ;;  %v729_v14 = vld [vmem:[#allocation1 + $0x1] ss:$4 sm:$0xff]  ;;  %v887_v10 = vrot.slane %v882_v5, 6 }
 0x149   :  { %v883_v7 = vld [vmem:[#allocation8 + $0x28] sm:$0x3] }
 0x14a   :  { %v710_v56 = vadd.f32 %v709_v8, %v659_v59  ;;  %v731_v16 = vadd.f32 %v729_v14, %v712_v13  ;;  %v881_v14 = vld [vmem:[#allocation8 + $0x18] sm:$0x3] }
 0x14c   :  { %v1698_v9 = vadd.f32 -1.0, %v710_v56  ;;  %v765_v47 = vmul.f32 0.2, %v731_v16 }
 0x14e   :  { %vm714_vm5 = vcmp.gt.f32.partialorder %v1698_v9, 0.0  ;;  %v766_v50 = vsub.f32 %v731_v16, %v765_v47 }
 0x14f   :  { %v1699_v32 = vsel %vm714_vm5, 1.0, %v1977_v0 }
 0x150   :  { %735 = vrot.lane.b32.xlu1 %v1699_v32, %s1978_s9  ;;  %v717_v12 = vsub.f32 1.0, %v1699_v32  ;;  %733 = vst.msk [vmem:[#allocation13 + $0x6] sm:$0x3f] %vm2043_vm4, %v1699_v32 }
 0x152   :  { %v718_v15 = vmul.f32 %v717_v12, %v710_v56 }
 0x154   :  { %v761_v17 = vsub.f32 0.0, %v718_v15 }
 0x156   :  { %v762_v18 = vadd.f32 %v761_v17, %v731_v16  ;;  %v889_v17 = vsel %vm33_vm0, %v881_v14, %v887_v10 }
 0x158   :  { %v763_v20 = vmul.f32 0.1, %v762_v18 }
 0x15a   :  { %v764_v21 = vadd.f32 %v763_v20, %v718_v15 }
 0x15c   :  { %v1700_v22 = vadd.f32 -1.0, %v764_v21 }
 0x15e   :  { %vm768_vm6 = vcmp.gt.f32.partialorder %v1700_v22, 0.0 }
 0x15f   :  { %v1701_v23 = vsel %vm768_vm6, 1.0, %v1977_v0 }
 0x160   :  { %789 = vrot.lane.b32.xlu1 %v1701_v23, %s1978_s9  ;;  %787 = vst.msk [vmem:[#allocation13 + $0xc] sm:$0x3f] %vm2043_vm4, %v1701_v23  ;;  %v771_v44 = vsub.f32 1.0, %v1701_v23 }
 0x162   :  { %v772_v49 = vmul.f32 %v771_v44, %v764_v21 }
 0x164   :  { %v815_v53 = vsub.f32 0.0, %v772_v49 }
 0x1c2   :  { %v736_v24 = vpop.permute.xlu1 %735 }
 0x1c3   :  { %v737_v25 = vrot.slane %v736_v24, 2 }
 0x1c5   :  { %v738_v26 = vsel %vm683_vm12, %v736_v24, %v737_v25 }
 0x1c6   :  { %v740_v27 = vmax.f32 %v1699_v32, %v738_v26  ;;  %v888_v32 = vrot.slane %v883_v7, 4 }
 0x1c8   :  { %742 = vrot.lane.b32.xlu2 %v740_v27, %s1979_s21  ;;  %v890_v18 = vsel %vm670_vm3, %v889_v17, %v888_v32  ;;  %v985_v32 = vld [vmem:[#allocation8 + $0x18] sm:$0x30]  ;;  %v986_v17 = vld [vmem:[#allocation8 + $0x20] sm:$0x30] }
 0x1d2   :  { %v790_v28 = vpop.permute.xlu1 %789 }
 0x1d3   :  { %v791_v29 = vrot.slane %v790_v28, 2 }
 0x1d5   :  { %v792_v30 = vsel %vm683_vm12, %v790_v28, %v791_v29 }
 0x1d6   :  { %v794_v31 = vmax.f32 %v1701_v23, %v792_v30 }
 0x1d8   :  { %796 = vrot.lane.b32.xlu2 %v794_v31, %s1979_s21 }
 0x222   :  { %v743_v33 = vpop.permute.xlu2 %742 }
 0x223   :  { %v744_v34 = vrot.slane %v743_v33, 2 }
 0x225   :  { %v745_v35 = vsel %vm691_vm15, %v743_v33, %v744_v34 }
 0x226   :  { %v747_v36 = vmax.f32 %v740_v27, %v745_v35 }
 0x228   :  { %750 = vst [vmem:[#allocation1 + $0x1] ss:$4 sm:$0xff] %v747_v36 }
 0x22f   :  { %v751_v38 = vld.sshfl [vmem:[#allocation1] sm:$0xff pattern:$0x73625140]  ;;  %v752_v39 = vld.sshfl [vmem:[#allocation1 + $0x8] sm:$0xff pattern:$0x73625140] }
 0x230   :  { %v753_v40 = vld.sshfl [vmem:[#allocation1 + $0x10] sm:$0xff pattern:$0x73625140]  ;;  %779 = vst.sshfl [vmem:[#allocation1] sm:$0xff pattern:$0x73625140] %v773_v37 }
 0x231   :  { %760 = vst.msk [vmem:[#allocation9 + $0x10] sm:$0xc] %vm759_vm7, %v753_v40 }
 0x232   :  { %780 = vst.sshfl [vmem:[#allocation1 + $0x8] sm:$0xff pattern:$0x73625140] %v774_v41  ;;  %v797_v43 = vpop.permute.xlu2 %796 }
 0x233   :  { %781 = vst.sshfl [vmem:[#allocation1 + $0x10] sm:$0xff pattern:$0x73625140] %v775_v42  ;;  %v798_v45 = vrot.slane %v797_v43, 2 }
 0x234   :  { %757 = vst [vmem:[#allocation9] sm:$0xc] %v751_v38 }
 0x235   :  { %v799_v46 = vsel %vm691_vm15, %v797_v43, %v798_v45  ;;  %758 = vst [vmem:[#allocation9 + $0x8] sm:$0xc] %v752_v39 }
 0x236   :  { %v801_v48 = vmax.f32 %v794_v31, %v799_v46 }
 0x23a   :  { %v783_v51 = vld [vmem:[#allocation1 + $0x2] ss:$4 sm:$0xff] }
 0x23b   :  { %804 = vst [vmem:[#allocation1 + $0x2] ss:$4 sm:$0xff] %v801_v48  ;;  %v785_v52 = vadd.f32 %v783_v51, %v766_v50 }
 0x23d   :  { %v816_v54 = vadd.f32 %v815_v53, %v785_v52  ;;  %v819_v11 = vmul.f32 0.2, %v785_v52 }
 0x23f   :  { %v817_v55 = vmul.f32 0.1, %v816_v54  ;;  %v820_v6 = vsub.f32 %v785_v52, %v819_v11 }
 0x241   :  { %v818_v19 = vadd.f32 %v817_v55, %v772_v49 }
 0x242   :  { %v805_v59 = vld.sshfl [vmem:[#allocation1] sm:$0xff pattern:$0x73625140]  ;;  %v806_v60 = vld.sshfl [vmem:[#allocation1 + $0x8] sm:$0xff pattern:$0x73625140] }
 0x243   :  { %v807_v61 = vld.sshfl [vmem:[#allocation1 + $0x10] sm:$0xff pattern:$0x73625140]  ;;  %833 = vst.sshfl [vmem:[#allocation1] sm:$0xff pattern:$0x73625140] %v827_v57 }
 0x244   :  { %834 = vst.sshfl [vmem:[#allocation1 + $0x8] sm:$0xff pattern:$0x73625140] %v828_v58  ;;  %v1702_v63 = vadd.f32 -1.0, %v818_v19  ;;  %v932_v57 = vld [vmem:[#allocation8 + $0x18] sm:$0xc] }
 0x245   :  { %835 = vst.sshfl [vmem:[#allocation1 + $0x10] sm:$0xff pattern:$0x73625140] %v829_v62  ;;  %v933_v58 = vld [vmem:[#allocation8 + $0x20] sm:$0xc] }
 0x246   :  { %811 = vst [vmem:[#allocation9] sm:$0x30] %v805_v59  ;;  %vm822_vm8 = vcmp.gt.f32.partialorder %v1702_v63, 0.0  ;;  %v934_v62 = vld [vmem:[#allocation8 + $0x28] sm:$0xc] }
 0x247   :  { %812 = vst [vmem:[#allocation9 + $0x8] sm:$0x30] %v806_v60  ;;  %v1703_v1 = vsel %vm822_vm8, 1.0, %v1977_v0 }
 0x248   :  { %843 = vrot.lane.b32.xlu0 %v1703_v1, %s1978_s9  ;;  %v825_v2 = vsub.f32 1.0, %v1703_v1  ;;  %841 = vst.msk [vmem:[#allocation13 + $0x12] sm:$0x3f] %vm2043_vm4, %v1703_v1 }
 0x249   :  { %814 = vst.msk [vmem:[#allocation9 + $0x10] sm:$0x30] %vm813_vm9, %v807_v61 }
 0x24a   :  { %v826_v4 = vmul.f32 %v825_v2, %v818_v19 }
 0x24c   :  { %v837_v8 = vld [vmem:[#allocation1 + $0x3] ss:$4 sm:$0xff]  ;;  %v869_v56 = vsub.f32 0.0, %v826_v4 }
 0x24d   :  { %v839_v9 = vadd.f32 %v837_v8, %v820_v6 }
 0x24f   :  { %v870_v12 = vadd.f32 %v869_v56, %v839_v9  ;;  %v873_v13 = vmul.f32 0.2, %v839_v9 }
 0x251   :  { %v871_v15 = vmul.f32 0.1, %v870_v12  ;;  %v874_v16 = vsub.f32 %v839_v9, %v873_v13 }
 0x253   :  { %v872_v20 = vadd.f32 %v871_v15, %v826_v4  ;;  %v2412_v21 = vadd.f32 %v890_v18, %v874_v16  ;;  %v987_v18 = vld [vmem:[#allocation8 + $0x28] sm:$0x30] }
 0x255   :  { %v1704_v22 = vadd.f32 -1.0, %v872_v20  ;;  %v924_v11 = vmul.f32 0.2, %v2412_v21 }
 0x257   :  { %vm876_vm10 = vcmp.gt.f32.partialorder %v1704_v22, 0.0  ;;  %v925_v6 = vsub.f32 %v2412_v21, %v924_v11 }
 0x258   :  { %v1705_v23 = vsel %vm876_vm10, 1.0, %v1977_v0 }
 0x259   :  { %896 = vrot.lane.b32.xlu1 %v1705_v23, %s1978_s9  ;;  %v879_v24 = vsub.f32 1.0, %v1705_v23  ;;  %894 = vst.msk [vmem:[#allocation13 + $0x18] sm:$0x3f] %vm2043_vm4, %v1705_v23 }
 0x25b   :  { %v880_v25 = vmul.f32 %v879_v24, %v872_v20 }
 0x25d   :  { %v920_v26 = vsub.f32 0.0, %v880_v25 }
 0x25f   :  { %v921_v27 = vadd.f32 %v920_v26, %v2412_v21 }
 0x261   :  { %v922_v28 = vmul.f32 0.1, %v921_v27 }
 0x263   :  { %v923_v29 = vadd.f32 %v922_v28, %v880_v25 }
 0x265   :  { %v1706_v30 = vadd.f32 -1.0, %v923_v29 }
 0x267   :  { %vm927_vm11 = vcmp.gt.f32.partialorder %v1706_v30, 0.0 }
 0x268   :  { %v1707_v31 = vsel %vm927_vm11, 1.0, %v1977_v0 }
 0x269   :  { %948 = vrot.lane.b32.xlu2 %v1707_v31, %s1978_s9  ;;  %946 = vst.msk [vmem:[#allocation13 + $0x1e] sm:$0x3f] %vm2043_vm4, %v1707_v31 }
 0x2ba   :  { %v844_v33 = vpop.permute.xlu0 %843 }
 0x2bb   :  { %v845_v34 = vrot.slane %v844_v33, 2 }
 0x2bd   :  { %v846_v35 = vsel %vm683_vm12, %v844_v33, %v845_v34 }
 0x2be   :  { %v848_v36 = vmax.f32 %v1703_v1, %v846_v35  ;;  %v930_v1 = vsub.f32 1.0, %v1707_v31 }
 0x2c0   :  { %850 = vrot.lane.b32.xlu0 %v848_v36, %s1979_s21  ;;  %v931_v4 = vmul.f32 %v930_v1, %v923_v29 }
 0x2c2   :  { %v973_v56 = vsub.f32 0.0, %v931_v4 }
 0x2c3   :  { %v949_v37 = vpop.permute.xlu2 %948 }
 0x2c4   :  { %v950_v38 = vrot.slane %v949_v37, 2 }
 0x2c6   :  { %v951_v39 = vsel %vm683_vm12, %v949_v37, %v950_v38 }
 0x2c7   :  { %v953_v40 = vmax.f32 %v1707_v31, %v951_v39 }
 0x2c9   :  { %955 = vrot.lane.b32.xlu2 %v953_v40, %s1979_s21 }
 0x2cb   :  { %v897_v41 = vpop.permute.xlu1 %896 }
 0x2cc   :  { %v898_v42 = vrot.slane %v897_v41, 2 }
 0x2ce   :  { %v899_v43 = vsel %vm683_vm12, %v897_v41, %v898_v42 }
 0x2cf   :  { %v901_v44 = vmax.f32 %v1705_v23, %v899_v43 }
 0x2d1   :  { %903 = vrot.lane.b32.xlu1 %v901_v44, %s1979_s21 }
 0x323   :  { %v956_v19 = vpop.permute.xlu2 %955 }
 0x324   :  { %v957_v63 = vrot.slane %v956_v19, 2 }
 0x326   :  { %v958_v2 = vsel %vm691_vm15, %v956_v19, %v957_v63  ;;  %v1854_v19 = vld [vmem:[%s2566_s3 + $0x68] sm:$0xff]  ;;  %v1853_v63 = vld [vmem:[%s2566_s3 + $0x60] sm:$0xff] }
 0x327   :  { %v960_v5 = vmax.f32 %v953_v40, %v958_v2 }
 0x332   :  { %v851_v45 = vpop.permute.xlu0 %850 }
 0x333   :  { %v852_v46 = vrot.slane %v851_v45, 2 }
 0x335   :  { %v853_v47 = vsel %vm691_vm15, %v851_v45, %v852_v46  ;;  %v1856_v45 = vld [vmem:[%s2566_s3 + $0x78] sm:$0xff]  ;;  %v1847_v46 = vld [vmem:[%s2566_s3 + $0x30] sm:$0xff] }
 0x336   :  { %v855_v48 = vmax.f32 %v848_v36, %v853_v47  ;;  %1279 = vmatpush.bf16.msrb.mxu3 %v1856_v45  ;;  %v1855_v47 = vld [vmem:[%s2566_s3 + $0x70] sm:$0xff] }
 0x338   :  { %858 = vst [vmem:[#allocation1 + $0x3] ss:$4 sm:$0xff] %v855_v48 }
 0x33a   :  { %1280 = vmatpush.bf16.msrb.mxu3 %v1855_v47 }
 0x33e   :  { %1281 = vmatpush.bf16.msrb.mxu3 %v1854_v19 }
 0x33f   :  { %v859_v49 = vld.sshfl [vmem:[#allocation1] sm:$0xff pattern:$0x73625140]  ;;  %v860_v50 = vld.sshfl [vmem:[#allocation1 + $0x8] sm:$0xff pattern:$0x73625140] }
 0x340   :  { %v861_v51 = vld.sshfl [vmem:[#allocation1 + $0x10] sm:$0xff pattern:$0x73625140]  ;;  %865 = vst [vmem:[#allocation9] sm:$0xc0] %v859_v49 }
 0x341   :  { %866 = vst [vmem:[#allocation9 + $0x8] sm:$0xc0] %v860_v50 }
 0x342   :  { %868 = vst.msk [vmem:[#allocation9 + $0x10] sm:$0xc0] %vm867_vm13, %v861_v51  ;;  %1282 = vmatpush.bf16.msrb.mxu3 %v1853_v63 }
 0x343   :  { %v904_v52 = vpop.permute.xlu1 %903 }
 0x344   :  { %v905_v53 = vrot.slane %v904_v52, 2 }
 0x346   :  { %v906_v54 = vsel %vm691_vm15, %v904_v52, %v905_v53  ;;  %v1038_v52 = vld [vmem:[#allocation8 + $0x18] sm:$0xc0] }
 0x347   :  { %v908_v55 = vmax.f32 %v901_v44, %v906_v54  ;;  %v1848_v44 = vld [vmem:[%s2566_s3 + $0x38] sm:$0xff] }
 0x348   :  { %1265 = vmatpush.bf16.msrb.mxu2 %v1848_v44 }
 0x349   :  { %910 = vst [vmem:[#allocation1] ss:$4 sm:$0xff] %v908_v55  ;;  %v1039_v55 = vld [vmem:[#allocation8 + $0x20] sm:$0xc0] }
 0x34c   :  { %1266 = vmatpush.bf16.msrb.mxu2 %v1847_v46 }
 0x350   :  { %v911_v59 = vld.sshfl [vmem:[#allocation1] sm:$0xff pattern:$0x73625140]  ;;  %v912_v60 = vld.sshfl [vmem:[#allocation1 + $0x8] sm:$0xff pattern:$0x73625140] }
 0x351   :  { %v913_v61 = vld.sshfl [vmem:[#allocation1 + $0x10] sm:$0xff pattern:$0x73625140]  ;;  %938 = vst.sshfl [vmem:[#allocation1] sm:$0xff pattern:$0x73625140] %v932_v57 }
 0x352   :  { %939 = vst.sshfl [vmem:[#allocation1 + $0x8] sm:$0xff pattern:$0x73625140] %v933_v58  ;;  %v1846_v58 = vld [vmem:[%s2566_s3 + $0x28] sm:$0xff] }
 0x353   :  { %940 = vst.sshfl [vmem:[#allocation1 + $0x10] sm:$0xff pattern:$0x73625140] %v934_v62  ;;  %1267 = vmatpush.bf16.msrb.mxu2 %v1846_v58  ;;  %v1845_v62 = vld [vmem:[%s2566_s3 + $0x20] sm:$0xff] }
 0x354   :  { %917 = vst [vmem:[#allocation9 + $0x18] sm:$0x3] %v911_v59  ;;  %v1130_v59 = vld [vmem:[%s2566_s3 + $0xa0] sm:$0x3] }
 0x355   :  { %918 = vst [vmem:[#allocation9 + $0x20] sm:$0x3] %v912_v60  ;;  %v1040_v60 = vld [vmem:[#allocation8 + $0x28] sm:$0xc0] }
 0x356   :  { %919 = vst.msk [vmem:[#allocation9 + $0x28] sm:$0x3] %vm705_vm1, %v913_v61  ;;  %v1216_v61 = vunpack.c.l.b16 %v1130_v59 }
 0x357   :  { %1268 = vmatpush.bf16.msrb.mxu2 %v1845_v62 }
 0x358   :  { %v1237_v1 = vpack.c.b16 %v1216_v61, %v1216_v61 }
 0x35a   :  { %v942_v7 = vld [vmem:[#allocation1 + $0x1] ss:$4 sm:$0xff]  ;;  %v1263_v2 = vsel %vm33_vm0, %v1237_v1, 0  ;;  %vm1258_vm0 = vcmask 556032  }
 0x35b   :  { %v944_v8 = vadd.f32 %v942_v7, %v925_v6  ;;  %963 = vst [vmem:[#allocation1 + $0x1] ss:$4 sm:$0xff] %v960_v5  ;;  %1296 = vmatpush.bf16.msra.mxu0 %v1263_v2  ;;  %v1852_v5 = vld [vmem:[%s2566_s3 + $0x58] sm:$0xff] }
 0x35c   :  { %v1860_v6 = vld [vmem:[%s2566_s3 + $0x98] sm:$0xff]  ;;  %1283 = vmatpush.bf16.msrb.mxu3 %v1852_v5 }
 0x35d   :  { %v974_v9 = vadd.f32 %v973_v56, %v944_v8  ;;  %v977_v22 = vmul.f32 0.2, %v944_v8 }
 0x35f   :  { %v975_v10 = vmul.f32 0.1, %v974_v9  ;;  %v978_v24 = vsub.f32 %v944_v8, %v977_v22  ;;  %v1843_v8 = vld [vmem:[%s2566_s3 + $0x10] sm:$0xff]  ;;  %1297 = vmatpush.bf16.msra.mxu0 %v1860_v6 }
 0x360   :  { %v1851_v9 = vld [vmem:[%s2566_s3 + $0x50] sm:$0xff] }
 0x361   :  { %v976_v12 = vadd.f32 %v975_v10, %v931_v4  ;;  %v1844_v4 = vld [vmem:[%s2566_s3 + $0x18] sm:$0xff]  ;;  %v1859_v10 = vld [vmem:[%s2566_s3 + $0x90] sm:$0xff]  ;;  %1284 = vmatpush.bf16.msrb.mxu3 %v1851_v9 }
 0x362   :  { %v964_v13 = vld.sshfl [vmem:[#allocation1] sm:$0xff pattern:$0x73625140]  ;;  %v965_v14 = vld.sshfl [vmem:[#allocation1 + $0x8] sm:$0xff pattern:$0x73625140]  ;;  %1269 = vmatpush.bf16.msrb.mxu2 %v1844_v4 }
 0x363   :  { %v966_v15 = vld.sshfl [vmem:[#allocation1 + $0x10] sm:$0xff pattern:$0x73625140]  ;;  %v1708_v16 = vadd.f32 -1.0, %v976_v12  ;;  %970 = vst [vmem:[#allocation9 + $0x18] sm:$0xc] %v964_v13  ;;  %1298 = vmatpush.bf16.msra.mxu0 %v1859_v10 }
 0x364   :  { %991 = vst.sshfl [vmem:[#allocation1] sm:$0xff pattern:$0x73625140] %v985_v32  ;;  %v1850_v13 = vld [vmem:[%s2566_s3 + $0x48] sm:$0xff] }
 0x365   :  { %vm980_vm14 = vcmp.gt.f32.partialorder %v1708_v16, 0.0  ;;  %992 = vst.sshfl [vmem:[#allocation1 + $0x8] sm:$0xff pattern:$0x73625140] %v986_v17  ;;  %1285 = vmatpush.bf16.msrb.mxu3 %v1850_v13  ;;  %v1857_v16 = vld [vmem:[%s2566_s3 + $0x80] sm:$0xff] }
 0x366   :  { %v1709_v20 = vsel %vm980_vm14, 1.0, %v1977_v0  ;;  %993 = vst.sshfl [vmem:[#allocation1 + $0x10] sm:$0xff pattern:$0x73625140] %v987_v18  ;;  %1270 = vmatpush.bf16.msrb.mxu2 %v1843_v8 }
 0x367   :  { %1001 = vrot.lane.b32.xlu0 %v1709_v20, %s1978_s9  ;;  %v983_v21 = vsub.f32 1.0, %v1709_v20  ;;  %999 = vst.msk [vmem:[#allocation13 + $0x24] sm:$0x3f] %vm2043_vm4, %v1709_v20 }
 0x368   :  { %971 = vst [vmem:[#allocation9 + $0x20] sm:$0xc] %v965_v14  ;;  %v1858_v14 = vld [vmem:[%s2566_s3 + $0x88] sm:$0xff] }
 0x369   :  { %972 = vst.msk [vmem:[#allocation9 + $0x28] sm:$0xc] %vm759_vm7, %v966_v15  ;;  %v984_v23 = vmul.f32 %v983_v21, %v976_v12  ;;  %v1842_v12 = vld [vmem:[%s2566_s3 + $0x8] sm:$0xff]  ;;  %1299 = vmatpush.bf16.msra.mxu0 %v1858_v14  ;;  %v1849_v15 = vld [vmem:[%s2566_s3 + $0x40] sm:$0xff] }
 0x36a   :  { %1271 = vmatpush.bf16.msrb.mxu2 %v1842_v12  ;;  %1286 = vmatpush.bf16.msrb.mxu3 %v1849_v15 }
 0x36b   :  { %v1026_v25 = vsub.f32 0.0, %v984_v23 }
 0x36d   :  { %v995_v26 = vld [vmem:[#allocation1 + $0x2] ss:$4 sm:$0xff]  ;;  %1300 = vmatpush.bf16.msra.mxu0 %v1857_v16 }
 0x36e   :  { %v2441_v27 = vadd.f32 %v995_v26, %v978_v24  ;;  %1272 = vmatpush.bf16.msrb.mxu2 %v1841_v3 }
 0x370   :  { %v1027_v28 = vadd.f32 %v1026_v25, %v2441_v27  ;;  %v1030_v11 = vmul.f32 0.2, %v2441_v27  ;;  %v1081_v25 = vld [vmem:[#allocation9] sm:$0xff] }
 0x372   :  { %v1028_v29 = vmul.f32 0.1, %v1027_v28  ;;  %v1031_v7 = vsub.f32 %v2441_v27, %v1030_v11  ;;  %v1082_v28 = vld [vmem:[#allocation9 + $0x8] sm:$0xff] }
 0x374   :  { %v1029_v30 = vadd.f32 %v1028_v29, %v984_v23 }
 0x376   :  { %v1710_v31 = vadd.f32 -1.0, %v1029_v30 }
 0x378   :  { %vm1033_vm1 = vcmp.gt.f32.partialorder %v1710_v31, 0.0  ;;  %v1083_v31 = vld [vmem:[#allocation9 + $0x10] sm:$0xff] }
 0x379   :  { %v1711_v33 = vsel %vm1033_vm1, 1.0, %v1977_v0 }
 0x37a   :  { %1054 = vrot.lane.b32.xlu1 %v1711_v33, %s1978_s9  ;;  %v1036_v34 = vsub.f32 1.0, %v1711_v33  ;;  %1052 = vst.msk [vmem:[#allocation13 + $0x2a] sm:$0x3f] %vm2043_vm4, %v1711_v33  ;;  %s1452_s9 = sshll.u32 %s1983_s6, 4  ;;  %s1453_s9 = int_to_ptr.vmem [resolvable:$true] %s1452_s9 }
 0x37b   :  { %1434 = dma.vmem_to_hbm [thread:$0]  %s1427_s22, 768, %s1429_s20, [#allocation14], %s1981_s23, %s1981_s23, %s1982_s24  }
 0x37c   :  { %v1037_v35 = vmul.f32 %v1036_v34, %v1029_v30  ;;  %1460 = dma.vmem_to_hbm [thread:$0]  %s1453_s9, 512, %s1455_s2, [#allocation17], %s1984_s26, %s1984_s26, %s1985_s27  }
 0x37e   :  { %1079 = vst.msk [vmem:[#allocation3] sm:$0x3f] %vm2043_vm4, %v1037_v35  ;;  %v1874_v35 = vld [vmem:[%s2567_s4] ss:$0 sm:$0xff]  ;;  %s1986_s4 = smov [#allocation15]  }
 0x37f   :  { %s1439_s8 = sshll.u32 %s1986_s4, 4  ;;  %s1440_s8 = int_to_ptr.vmem [resolvable:$true] %s1439_s8 }
 0x3d9   :  { %v1002_v36 = vpop.permute.xlu0 %1001 }
 0x3da   :  { %v1003_v37 = vrot.slane %v1002_v36, 2 }
 0x3dc   :  { %v1004_v38 = vsel %vm683_vm12, %v1002_v36, %v1003_v37 }
 0x3dd   :  { %v1006_v39 = vmax.f32 %v1709_v20, %v1004_v38 }
 0x3df   :  { %1008 = vrot.lane.b32.xlu2 %v1006_v39, %s1979_s21 }
 0x3ec   :  { %v1055_v40 = vpop.permute.xlu1 %1054 }
 0x3ed   :  { %v1056_v41 = vrot.slane %v1055_v40, 2 }
 0x3ef   :  { %v1057_v42 = vsel %vm683_vm12, %v1055_v40, %v1056_v41  ;;  %vm1307_vm12 = vcmask 80896  }
 0x3f0   :  { %v2453_v43 = vmax.f32 %v1711_v33, %v1057_v42 }
 0x3f2   :  { %1061 = vrot.lane.b32.xlu0 %v2453_v43, %s1979_s21  ;;  %s1441_s21 = sshll.u32 %s2570_s7, 4  ;;  %s1416_s7 = sshll.u32 %s1989_s13, 4  ;;  %s1442_s21 = int_to_ptr.hbm [resolvable:$true] %s1441_s21  ;;  %s1417_s7 = int_to_ptr.vmem [resolvable:$true] %s1416_s7 }
 0x439   :  { %v1009_v48 = vpop.permute.xlu2 %1008 }
 0x43a   :  { %v1010_v49 = vrot.slane %v1009_v48, 2 }
 0x43c   :  { %v1011_v50 = vsel %vm691_vm15, %v1009_v48, %v1010_v49 }
 0x43d   :  { %v1013_v51 = vmax.f32 %v1006_v39, %v1011_v50 }
 0x43f   :  { %1016 = vst [vmem:[#allocation1 + $0x2] ss:$4 sm:$0xff] %v1013_v51 }
 0x446   :  { %v1017_v53 = vld.sshfl [vmem:[#allocation1] sm:$0xff pattern:$0x73625140]  ;;  %v1018_v54 = vld.sshfl [vmem:[#allocation1 + $0x8] sm:$0xff pattern:$0x73625140] }
 0x447   :  { %v1019_v57 = vld.sshfl [vmem:[#allocation1 + $0x10] sm:$0xff pattern:$0x73625140]  ;;  %1023 = vst [vmem:[#allocation9 + $0x18] sm:$0x30] %v1017_v53 }
 0x448   :  { %1024 = vst [vmem:[#allocation9 + $0x20] sm:$0x30] %v1018_v54 }
 0x449   :  { %1044 = vst.sshfl [vmem:[#allocation1] sm:$0xff pattern:$0x73625140] %v1038_v52 }
 0x44a   :  { %1045 = vst.sshfl [vmem:[#allocation1 + $0x8] sm:$0xff pattern:$0x73625140] %v1039_v55 }
 0x44b   :  { %1046 = vst.sshfl [vmem:[#allocation1 + $0x10] sm:$0xff pattern:$0x73625140] %v1040_v60 }
 0x44c   :  { %1025 = vst.msk [vmem:[#allocation9 + $0x28] sm:$0x30] %vm813_vm9, %v1019_v57 }
 0x452   :  { %v1048_v56 = vld [vmem:[#allocation1 + $0x3] ss:$4 sm:$0xff] }
 0x453   :  { %v1050_v32 = vadd.f32 %v1048_v56, %v1031_v7 }
 0x455   :  { %1080 = vst.msk [vmem:[#allocation4] sm:$0x3f] %vm2043_vm4, %v1050_v32  ;;  %vm40_vm4 = vcmask 74752  }
 0x456   :  { %42 = vst.msk [vmem:[#allocation6] sm:$0x3] %vm40_vm4, %v1977_v0 }
 0x457   :  { %41 = vst.msk [vmem:[#allocation5] sm:$0x3] %vm40_vm4, %v1977_v0 }
 0x458   :  { %43 = vst.msk [vmem:[#allocation11] sm:$0x3] %vm40_vm4, %v1977_v0 }
 0x45d   :  { %v1311_v46 = vld [vmem:[#allocation6] sm:$0x3] }
 0x45e   :  { %v1310_v44 = vld [vmem:[#allocation5] sm:$0x3] }
 0x45f   :  { %v1314_v49 = vsub.f32 0.0, %v1310_v44 }
 0x464   :  { %v1062_v17 = vpop.permute.xlu0 %1061 }
 0x465   :  { %v1063_v18 = vrot.slane %v1062_v17, 2 }
 0x467   :  { %v1064_v20 = vsel %vm691_vm15, %v1062_v17, %v1063_v18 }
 0x468   :  { %v1066_v21 = vmax.f32 %v2453_v43, %v1064_v20 }
 0x46a   :  { %1069 = vst [vmem:[#allocation1 + $0x3] ss:$4 sm:$0xff] %v1066_v21 }
 0x471   :  { %v1070_v22 = vld.sshfl [vmem:[#allocation1] sm:$0xff pattern:$0x73625140]  ;;  %v1071_v23 = vld.sshfl [vmem:[#allocation1 + $0x8] sm:$0xff pattern:$0x73625140] }
 0x472   :  { %1076 = vst [vmem:[#allocation9 + $0x18] sm:$0xc0] %v1070_v22  ;;  %v1072_v24 = vld.sshfl [vmem:[#allocation1 + $0x10] sm:$0xff pattern:$0x73625140] }
 0x473   :  { %1077 = vst [vmem:[#allocation9 + $0x20] sm:$0xc0] %v1071_v23 }
 0x474   :  { %1078 = vst.msk [vmem:[#allocation9 + $0x28] sm:$0xc0] %vm867_vm13, %v1072_v24 }
 0x479   :  { %v1084_v26 = vld [vmem:[#allocation9 + $0x18] sm:$0xff] }
 0x47a   :  { %v1087_v27 = vpack.c.bf16 %v1084_v26, %v1081_v25  ;;  %v1085_v29 = vld [vmem:[#allocation9 + $0x20] sm:$0xff] }
 0x47b   :  { %v1088_v30 = vpack.c.bf16 %v1085_v29, %v1082_v28  ;;  %v1086_v33 = vld [vmem:[#allocation9 + $0x28] sm:$0xff] }
 0x47c   :  { %1273 = vmatmul.bf16.vlgmr.msrb.gmra.mxu2 %v1087_v27  ;;  %v1089_v34 = vpack.c.bf16 %v1086_v33, %v1083_v31 }
 0x47d   :  { %1287 = vmatmul.bf16.vlgmr.msrb.gmra.mxu3 %v1088_v30 }
 0x47e   :  { %1792 = vmatmul.msk.bf16.vlgmr.msra.gmra.mxu0 %vm1258_vm0, %v1089_v34 }
 0x4fb   :  { %v1302_v39 = vpop.f32.mrf.mxu0 }
 0x4ff   :  { %v1274_v36 = vpop.f32.mrf.mxu2 }
 0x500   :  { %v1275_v37 = vadd.f32 %v1874_v35, %v1274_v36  ;;  %v1288_v38 = vpop.f32.mrf.mxu3 }
 0x502   :  { %v1289_v40 = vadd.f32 %v1288_v38, %v1275_v37 }
 0x503   :  { %v1304_v47 = vpop.f32.mrf.mxu0 }
 0x504   :  { %v1303_v41 = vadd.f32 %v1302_v39, %v1289_v40 }
 0x506   :  { %1308 = vst.msk [vmem:[#allocation10] sm:$0xff] %vm1307_vm12, %v1303_v41 }
 0x507   :  { %v1276_v0 = vpop.f32.mrf.mxu2 }
 0x508   :  { %v1277_v42 = vadd.f32 %v1874_v35, %v1276_v0  ;;  %v1290_v43 = vpop.f32.mrf.mxu3 }
 0x50a   :  { %v1291_v45 = vadd.f32 %v1290_v43, %v1277_v42 }
 0x50c   :  { %v1305_v48 = vadd.f32 %v1304_v47, %v1291_v45 }
 0x50d   :  { %v1312_v50 = vld [vmem:[#allocation10] sm:$0x3]  ;;  %v1323_v57 = vld [vmem:[#allocation10 + $0x2] sm:$0x3]  ;;  %v1334_v63 = vld [vmem:[#allocation10 + $0x4] sm:$0x3] }
 0x50e   :  { %v1313_v51 = vadd.f32 %v1312_v50, %v1311_v46  ;;  %1309 = vst.msk [vmem:[#allocation10 + $0x8] sm:$0xff] %vm1307_vm12, %v1305_v48  ;;  %v1345_v7 = vld [vmem:[#allocation10 + $0x6] sm:$0x3] }
 0x510   :  { %v1318_v52 = vmul.f32 0.2, %v1313_v51  ;;  %v1315_v53 = vadd.f32 %v1314_v49, %v1313_v51 }
 0x512   :  { %v1319_v54 = vsub.f32 %v1313_v51, %v1318_v52  ;;  %v1316_v55 = vmul.f32 0.1, %v1315_v53 }
 0x514   :  { %v1324_v58 = vadd.f32 %v1323_v57, %v1319_v54  ;;  %v1317_v19 = vadd.f32 %v1316_v55, %v1310_v44  ;;  %v1402_v55 = vld [vmem:[#allocation11] sm:$0x3] }
 0x515   :  { %v1356_v13 = vld [vmem:[#allocation10 + $0x8] sm:$0x3]  ;;  %v1367_v20 = vld [vmem:[#allocation10 + $0xa] sm:$0x3]  ;;  %v1378_v27 = vld [vmem:[#allocation10 + $0xc] sm:$0x3] }
 0x516   :  { %1321 = vst.msk [vmem:[#allocation15] sm:$0x3] %vm40_vm4, %v1317_v19  ;;  %v1325_v59 = vsub.f32 0.0, %v1317_v19  ;;  %v1329_v60 = vmul.f32 0.2, %v1324_v58 }
 0x517   :  { %v1389_v35 = vld [vmem:[#allocation10 + $0xe] sm:$0x3] }
 0x518   :  { %v1326_v61 = vadd.f32 %v1325_v59, %v1324_v58  ;;  %v1330_v62 = vsub.f32 %v1324_v58, %v1329_v60 }
 0x51a   :  { %v1327_v1 = vmul.f32 0.1, %v1326_v61  ;;  %v1335_v11 = vadd.f32 %v1334_v63, %v1330_v62 }
 0x51c   :  { %v1328_v2 = vadd.f32 %v1327_v1, %v1317_v19  ;;  %v1340_v4 = vmul.f32 0.2, %v1335_v11 }
 0x51e   :  { %1332 = vst.msk [vmem:[#allocation15 + $0x2] sm:$0x3] %vm40_vm4, %v1328_v2  ;;  %v1336_v5 = vsub.f32 0.0, %v1328_v2  ;;  %v1341_v6 = vsub.f32 %v1335_v11, %v1340_v4  ;;  %v1333_v43 = vadd.f32 %v1328_v2, %v1317_v19 }
 0x520   :  { %v1337_v8 = vadd.f32 %v1336_v5, %v1335_v11  ;;  %v1346_v56 = vadd.f32 %v1345_v7, %v1341_v6 }
 0x522   :  { %v1338_v9 = vmul.f32 0.1, %v1337_v8  ;;  %v1351_v10 = vmul.f32 0.2, %v1346_v56 }
 0x524   :  { %v1339_v32 = vadd.f32 %v1338_v9, %v1328_v2  ;;  %v1352_v12 = vsub.f32 %v1346_v56, %v1351_v10 }
 0x526   :  { %1343 = vst.msk [vmem:[#allocation15 + $0x4] sm:$0x3] %vm40_vm4, %v1339_v32  ;;  %v1347_v14 = vsub.f32 0.0, %v1339_v32  ;;  %v1357_v3 = vadd.f32 %v1356_v13, %v1352_v12  ;;  %v1344_v45 = vadd.f32 %v1339_v32, %v1333_v43 }
 0x528   :  { %v1348_v15 = vadd.f32 %v1347_v14, %v1346_v56  ;;  %v1362_v16 = vmul.f32 0.2, %v1357_v3 }
 0x52a   :  { %v1349_v17 = vmul.f32 0.1, %v1348_v15  ;;  %v1363_v18 = vsub.f32 %v1357_v3, %v1362_v16 }
 0x52c   :  { %v1350_v21 = vadd.f32 %v1349_v17, %v1339_v32  ;;  %v1368_v22 = vadd.f32 %v1367_v20, %v1363_v18 }
 0x52e   :  { %1354 = vst.msk [vmem:[#allocation15 + $0x6] sm:$0x3] %vm40_vm4, %v1350_v21  ;;  %v1358_v23 = vsub.f32 0.0, %v1350_v21  ;;  %v1373_v24 = vmul.f32 0.2, %v1368_v22  ;;  %v1355_v47 = vadd.f32 %v1350_v21, %v1344_v45 }
 0x530   :  { %v1359_v25 = vadd.f32 %v1358_v23, %v1357_v3  ;;  %v1374_v26 = vsub.f32 %v1368_v22, %v1373_v24 }
 0x532   :  { %v1360_v28 = vmul.f32 0.1, %v1359_v25  ;;  %v1379_v29 = vadd.f32 %v1378_v27, %v1374_v26 }
 0x534   :  { %v1361_v30 = vadd.f32 %v1360_v28, %v1350_v21  ;;  %v1384_v31 = vmul.f32 0.2, %v1379_v29 }
 0x536   :  { %1365 = vst.msk [vmem:[#allocation15 + $0x8] sm:$0x3] %vm40_vm4, %v1361_v30  ;;  %v1369_v33 = vsub.f32 0.0, %v1361_v30  ;;  %v1385_v34 = vsub.f32 %v1379_v29, %v1384_v31  ;;  %v1366_v49 = vadd.f32 %v1361_v30, %v1355_v47 }
 0x538   :  { %v1370_v36 = vadd.f32 %v1369_v33, %v1368_v22  ;;  %v1390_v37 = vadd.f32 %v1389_v35, %v1385_v34 }
 0x53a   :  { %v1371_v38 = vmul.f32 0.1, %v1370_v36  ;;  %v1395_v39 = vmul.f32 0.2, %v1390_v37 }
 0x53c   :  { %v1372_v40 = vadd.f32 %v1371_v38, %v1361_v30  ;;  %v1396_v41 = vsub.f32 %v1390_v37, %v1395_v39 }
 0x53e   :  { %1376 = vst.msk [vmem:[#allocation15 + $0xa] sm:$0x3] %vm40_vm4, %v1372_v40  ;;  %v1380_v0 = vsub.f32 0.0, %v1372_v40  ;;  %v1377_v51 = vadd.f32 %v1372_v40, %v1366_v49 }
 0x53f   :  { %1401 = vst.msk [vmem:[#allocation6] sm:$0x3] %vm40_vm4, %v1396_v41 }
 0x540   :  { %v1381_v42 = vadd.f32 %v1380_v0, %v1379_v29 }
 0x542   :  { %v1382_v44 = vmul.f32 0.1, %v1381_v42 }
 0x544   :  { %v1383_v46 = vadd.f32 %v1382_v44, %v1372_v40 }
 0x546   :  { %1387 = vst.msk [vmem:[#allocation15 + $0xc] sm:$0x3] %vm40_vm4, %v1383_v46  ;;  %v1391_v48 = vsub.f32 0.0, %v1383_v46  ;;  %v1388_v53 = vadd.f32 %v1383_v46, %v1377_v51 }
 0x548   :  { %v1392_v50 = vadd.f32 %v1391_v48, %v1390_v37 }
 0x54a   :  { %v1393_v52 = vmul.f32 0.1, %v1392_v50 }
 0x54c   :  { %v1394_v54 = vadd.f32 %v1393_v52, %v1383_v46 }
 0x54e   :  { %1398 = vst.msk [vmem:[#allocation15 + $0xe] sm:$0x3] %vm40_vm4, %v1394_v54  ;;  %v1399_v57 = vadd.f32 %v1394_v54, %v1388_v53 }
 0x54f   :  { %1400 = vst.msk [vmem:[#allocation5] sm:$0x3] %vm40_vm4, %v1394_v54  ;;  %1447 = dma.vmem_to_hbm [thread:$0]  %s1440_s8, 256, %s1442_s21, [#allocation14], %s1987_s11, %s1987_s11, %s1988_s12  }
 0x550   :  { %v1403_v58 = vadd.f32 %v1402_v55, %v1399_v57 }
 0x552   :  { %1404 = vst.msk [vmem:[#allocation11] sm:$0x3] %vm40_vm4, %v1403_v58 }
 0x559   :  { %v1408_v19 = vld [vmem:[#allocation11] sm:$0x3] }
 0x55a   :  { %v1409_v59 = vmul.f32 0.125, %v1408_v19 }
 0x55c   :  { %1410 = vst.msk [vmem:[#allocation11] sm:$0x3] %vm40_vm4, %v1409_v59 }
 0x55d   :  { %1421 = dma.vmem_to_hbm [thread:$0]  %s1417_s7, 32, %s1419_s16, [#allocation12]  }
 0x55e   :  { %1971 = dma.done.wait [#allocation12], 32  }
 0x55f   :  { %1972 = vsyncadd [#allocation12], 4294967264 }
 0x560   :  { %1973 = dma.done.wait [#allocation14], 1024  }
 0x561   :  { %1974 = vsyncadd [#allocation14], 4294966272 }
 0x562   :  { %1975 = dma.done.wait [#allocation17], 512  }
 0x563   :  { %1976 = vsyncadd [#allocation17], 4294966784 }
 0x564   :  { %1477 = vsyncpa [#allocation12], 1 }
 0x565   :  { %1478 = vsyncpa [#allocation14], 1 }
 0x566   :  { %1479 = vsyncpa [#allocation17], 1 }

</bundles_post_ra>
